<compile_context>
chip_gen: v7x
topology: tpu7x:2x2x1
jax: 0.10.0
libtpu: 0.0.40
codegen_flags: <defaults>
</compile_context>

<pallas_src>
import functools

import jax
import jax.numpy as jnp
from jax.experimental import pallas as pl
from jax.experimental.pallas import tpu as pltpu


def _round_up(x, m):
    return (x + m - 1) // m * m


# ----------------------------------------------------------------------------
# Fused Pallas kernel: DMA embedding gather + L LSTM cells + tiled fc_out.
# ----------------------------------------------------------------------------
def _decoder_step_kernel(tok_ref, emb_hbm_ref, h_in_ref, c_in_ref, *rest,
                         n_layers, hp):
    """Argument layout (PrefetchScalarGridSpec order):
       scalar prefetch: tok_ref [Bp] i32 (SMEM)
       inputs : emb_hbm [V, Ep] (HBM, pl.ANY), h_in [L,Bp,Hp], c_in [L,Bp,Hp],
                (w_l [Dp+Hp, 4Hp], b_l [1, 4Hp]) * n_layers,
                w_fc tile [Hp, TILE_V], b_fc tile [1, TILE_V]
       outputs: pred tile [Bp, TILE_V], h_out [L,Bp,Hp], c_out [L,Bp,Hp]
       scratch: x_scr [Bp, Hp] f32, emb_buf [Bp, Ep], sem [Bp] DMA
    """
    layer_refs = rest[:2 * n_layers]
    (w_fc_ref, b_fc_ref, pred_ref, h_out_ref, c_out_ref,
     x_scr, emb_buf, sem) = rest[2 * n_layers:]

    w_dtype = w_fc_ref.dtype
    bp = emb_buf.shape[0]
    j = pl.program_id(0)

    # The LSTM step (gather + recurrence) only runs on the first vocab tile;
    # its result is carried in VMEM scratch for the remaining fc_out tiles.
    @pl.when(j == 0)
    def _():
        # ---- Embedding gather: Bp tiny row DMAs HBM -> VMEM (token ids from SMEM).
        copies = []
        for b in range(bp):
            cp = pltpu.make_async_copy(
                emb_hbm_ref.at[pl.ds(tok_ref[b], 1)],   # one [1, Ep] row
                emb_buf.at[pl.ds(b, 1)],
                sem.at[b])
            cp.start()
            copies.append(cp)
        for cp in copies:
            cp.wait()

        # self.dropout(embedded): identity in eval mode.
        x = emb_buf[...].astype(jnp.float32)                      # [Bp, Ep]

        # ---- LSTM layers, one fused gate matmul per layer (PyTorch order i,f,g,o).
        for l in range(n_layers):
            w_ref, b_ref = layer_refs[2 * l], layer_refs[2 * l + 1]
            h_prev = h_in_ref[l]                                   # [Bp, Hp] f32
            c_prev = c_in_ref[l]                                   # [Bp, Hp] f32
            xh = jnp.concatenate(
                [x.astype(w_dtype), h_prev.astype(w_dtype)], axis=-1)
            gates = (jnp.dot(xh, w_ref[...],
                             preferred_element_type=jnp.float32)
                     + b_ref[...])                                 # [Bp, 4Hp] f32
            i_g = jax.nn.sigmoid(gates[:, 0 * hp:1 * hp])
            f_g = jax.nn.sigmoid(gates[:, 1 * hp:2 * hp])
            g_g = jnp.tanh(gates[:, 2 * hp:3 * hp])
            o_g = jax.nn.sigmoid(gates[:, 3 * hp:4 * hp])
            c_new = f_g * c_prev + i_g * g_g
            h_new = o_g * jnp.tanh(c_new)
            h_out_ref[l] = h_new
            c_out_ref[l] = c_new
            x = h_new           # inter-layer dropout: identity in eval mode

        x_scr[...] = x                                             # [Bp, Hp] f32

    # ---- fc_out: one lane-dense vocab tile per grid step (streamed weight). ----
    pred_ref[...] = (jnp.dot(x_scr[...].astype(w_dtype), w_fc_ref[...],
                             preferred_element_type=jnp.float32)
                     + b_fc_ref[...])


# ----------------------------------------------------------------------------
# Parameter preparation: fuse w_ih/w_hh per layer, transpose to [in, out],
# fuse biases, pad to (8, 128) vreg granularity.
# ----------------------------------------------------------------------------
def prepare_decoder_params(embedding, lstm_weights, w_fc, b_fc,
                           weight_dtype=jnp.float32, tile_v=None):
    """embedding: [V, E]; lstm_weights: list of (w_ih [4H,Din], w_hh [4H,H],
       b_ih [4H], b_hh [4H]) in PyTorch layout; w_fc: [V, H]; b_fc: [V]."""
    V, E = embedding.shape
    H = lstm_weights[0][1].shape[1]
    Ep, Hp = _round_up(E, 128), _round_up(H, 128)
    if tile_v is None:
        tile_v = min(512, _round_up(V, 128))
    assert tile_v % 128 == 0
    Vp = _round_up(V, tile_v)

    # Table stays f32 and in HBM (gathered row by row via DMA in the kernel).
    emb_p = jnp.zeros((V, Ep), jnp.float32).at[:, :E].set(
        embedding.astype(jnp.float32))

    layers = []
    for l, (w_ih, w_hh, b_ih, b_hh) in enumerate(lstm_weights):
        D = w_ih.shape[1]                       # E for layer 0, H otherwise
        Dp_x = Ep if l == 0 else Hp             # padded width of the x part
        w = jnp.zeros((Dp_x + Hp, 4 * Hp), weight_dtype)
        b = jnp.zeros((1, 4 * Hp), jnp.float32)
        for g in range(4):  # each gate block starts on a 128-lane boundary
            w = w.at[:D, g * Hp:g * Hp + H].set(
                w_ih[g * H:(g + 1) * H, :].T.astype(weight_dtype))
            w = w.at[Dp_x:Dp_x + H, g * Hp:g * Hp + H].set(
                w_hh[g * H:(g + 1) * H, :].T.astype(weight_dtype))
            b = b.at[0, g * Hp:g * Hp + H].set(
                (b_ih[g * H:(g + 1) * H] + b_hh[g * H:(g + 1) * H]
                 ).astype(jnp.float32))
        layers.append((w, b))

    w_fc_t = jnp.zeros((Hp, Vp), weight_dtype).at[:H, :V].set(
        w_fc.T.astype(weight_dtype))
    b_fc_p = jnp.zeros((1, Vp), jnp.float32).at[0, :V].set(
        b_fc.astype(jnp.float32))

    params = dict(emb=emb_p, layers=layers, w_fc_t=w_fc_t, b_fc=b_fc_p)
    dims = (V, E, H, Vp, Ep, Hp, tile_v)
    return params, dims


# ----------------------------------------------------------------------------
# Decoder forward (matches the PyTorch module, eval mode).
# ----------------------------------------------------------------------------
def decoder_forward(tokens, hidden, cell, params, dims):
    """tokens [B] int32, hidden/cell [L, B, H] f32 ->
       (prediction [B, V], hidden [L, B, H], cell [L, B, H])."""
    V, E, H, Vp, Ep, Hp, tile_v = dims
    L, B, _ = hidden.shape
    Bp = _round_up(B, 8)
    n_vt = Vp // tile_v

    tok_p = jnp.zeros((Bp,), jnp.int32).at[:B].set(tokens.astype(jnp.int32))
    h_p = jnp.zeros((L, Bp, Hp), jnp.float32).at[:, :B, :H].set(
        hidden.astype(jnp.float32))
    c_p = jnp.zeros((L, Bp, Hp), jnp.float32).at[:, :B, :H].set(
        cell.astype(jnp.float32))

    layer_arrays, layer_specs = [], []
    for (w, b) in params["layers"]:
        layer_arrays += [w, b]
        layer_specs += [pl.BlockSpec(w.shape, lambda j, tok: (0, 0)),
                        pl.BlockSpec(b.shape, lambda j, tok: (0, 0))]

    inputs = ([params["emb"], h_p, c_p] + layer_arrays
              + [params["w_fc_t"], params["b_fc"]])

    in_specs = (
        [pl.BlockSpec(memory_space=pl.ANY),                           # emb (HBM)
         pl.BlockSpec((L, Bp, Hp), lambda j, tok: (0, 0, 0)),         # h_in
         pl.BlockSpec((L, Bp, Hp), lambda j, tok: (0, 0, 0))]         # c_in
        + layer_specs                                                  # resident
        + [pl.BlockSpec((Hp, tile_v), lambda j, tok: (0, j)),         # w_fc tile
           pl.BlockSpec((1, tile_v), lambda j, tok: (0, j))])         # b_fc tile

    out_specs = (pl.BlockSpec((Bp, tile_v), lambda j, tok: (0, j)),   # pred tile
                 pl.BlockSpec((L, Bp, Hp), lambda j, tok: (0, 0, 0)),
                 pl.BlockSpec((L, Bp, Hp), lambda j, tok: (0, 0, 0)))

    out_shape = (jax.ShapeDtypeStruct((Bp, Vp), jnp.float32),
                 jax.ShapeDtypeStruct((L, Bp, Hp), jnp.float32),
                 jax.ShapeDtypeStruct((L, Bp, Hp), jnp.float32))

    scratch_shapes = [pltpu.VMEM((Bp, Hp), jnp.float32),              # x_scr
                      pltpu.VMEM((Bp, Ep), params["emb"].dtype),      # emb_buf
                      pltpu.SemaphoreType.DMA((Bp,))]

    # Explicit VMEM budget: double-buffered resident/streamed blocks + outputs
    # + scratch, with headroom, capped under v7x's 64 MiB physical VMEM.
    def _nbytes(a):
        return int(a.size) * a.dtype.itemsize
    w_isz = params["w_fc_t"].dtype.itemsize
    est = (2 * (2 * L * Bp * Hp * 4)                       # h_in, c_in
           + 2 * sum(_nbytes(a) for a in layer_arrays)     # LSTM weights/biases
           + 2 * (Hp * tile_v * w_isz + tile_v * 4)        # fc tile + bias tile
           + 2 * (Bp * tile_v * 4 + 2 * L * Bp * Hp * 4)   # outputs
           + Bp * Hp * 4 + Bp * Ep * params["emb"].dtype.itemsize)
    vmem_limit = int(min(48 * 2**20, max(16 * 2**20, 2 * est)))

    kernel = functools.partial(_decoder_step_kernel, n_layers=L, hp=Hp)

    pred_p, h_out_p, c_out_p = pl.pallas_call(
        kernel,
        out_shape=out_shape,
        grid_spec=pltpu.PrefetchScalarGridSpec(
            num_scalar_prefetch=1,
            grid=(n_vt,),
            in_specs=in_specs,
            out_specs=out_specs,
            scratch_shapes=scratch_shapes),
        compiler_params=pltpu.CompilerParams(
            # Vocab tiles reuse the j==0 LSTM result from VMEM scratch, so this
            # axis must run sequentially on one core -> "arbitrary".
            dimension_semantics=("arbitrary",),
            vmem_limit_bytes=vmem_limit),
    )(tok_p, *inputs)

    return pred_p[:B, :V], h_out_p[:, :B, :H], c_out_p[:, :B, :H]


# ----------------------------------------------------------------------------
# Pure-JAX reference for correctness check (raw PyTorch-layout params).
# ----------------------------------------------------------------------------
def decoder_forward_ref(tokens, hidden, cell, embedding, lstm_weights, w_fc, b_fc):
    x = embedding[tokens]
    H = hidden.shape[-1]
    new_h, new_c = [], []
    for l, (w_ih, w_hh, b_ih, b_hh) in enumerate(lstm_weights):
        gates = x @ w_ih.T + hidden[l] @ w_hh.T + b_ih + b_hh
        i_g = jax.nn.sigmoid(gates[:, 0:H])
        f_g = jax.nn.sigmoid(gates[:, H:2 * H])
        g_g = jnp.tanh(gates[:, 2 * H:3 * H])
        o_g = jax.nn.sigmoid(gates[:, 3 * H:4 * H])
        c_l = f_g * cell[l] + i_g * g_g
        h_l = o_g * jnp.tanh(c_l)
        new_h.append(h_l)
        new_c.append(c_l)
        x = h_l
    return x @ w_fc.T + b_fc, jnp.stack(new_h), jnp.stack(new_c)


# ----------------------------------------------------------------------------
if __name__ == "__main__":
    # Small, Decoder-consistent shapes; vocab chosen so the fc_out grid has >1 tile.
    output_dim, emb_dim, hidden_dim, n_layers = 200, 16, 32, 2
    batch = 4

    key = jax.random.PRNGKey(0)
    keys = jax.random.split(key, 20)
    bound = float(1.0 / (hidden_dim ** 0.5))

    # Deterministic parameter init (PyTorch layouts from the module's __init__).
    embedding = jax.random.uniform(keys[0], (output_dim, emb_dim),
                                   minval=-1.0, maxval=1.0, dtype=jnp.float32)
    lstm_weights = []
    for l in range(n_layers):
        in_dim = emb_dim if l == 0 else hidden_dim
        w_ih = jax.random.uniform(keys[1 + 4 * l], (4 * hidden_dim, in_dim),
                                  minval=-bound, maxval=bound, dtype=jnp.float32)
        w_hh = jax.random.uniform(keys[2 + 4 * l], (4 * hidden_dim, hidden_dim),
                                  minval=-bound, maxval=bound, dtype=jnp.float32)
        b_ih = jax.random.uniform(keys[3 + 4 * l], (4 * hidden_dim,),
                                  minval=-bound, maxval=bound, dtype=jnp.float32)
        b_hh = jax.random.uniform(keys[4 + 4 * l], (4 * hidden_dim,),
                                  minval=-bound, maxval=bound, dtype=jnp.float32)
        lstm_weights.append((w_ih, w_hh, b_ih, b_hh))
    w_fc = jax.random.uniform(keys[10], (output_dim, hidden_dim),
                              minval=-bound, maxval=bound, dtype=jnp.float32)
    b_fc = jax.random.uniform(keys[11], (output_dim,),
                              minval=-bound, maxval=bound, dtype=jnp.float32)

    # Example inputs.
    tokens = jax.random.randint(keys[12], (batch,), 0, output_dim, dtype=jnp.int32)
    hidden0 = jax.random.normal(keys[13], (n_layers, batch, hidden_dim),
                                dtype=jnp.float32)
    cell0 = jax.random.normal(keys[14], (n_layers, batch, hidden_dim),
                              dtype=jnp.float32)

    # Reference.
    pred_r, hid_r, cel_r = decoder_forward_ref(tokens, hidden0, cell0, embedding,
                                               lstm_weights, w_fc, b_fc)

    fwd = jax.jit(decoder_forward, static_argnums=(4,))

    # ---- f32 weights: tight correctness check (tile_v=128 -> 2 vocab tiles). ----
    params32, dims = prepare_decoder_params(embedding, lstm_weights, w_fc, b_fc,
                                            weight_dtype=jnp.float32, tile_v=128)
    pred, hid, cel = fwd(tokens, hidden0, cell0, params32, dims)
    jax.block_until_ready((pred, hid, cel))
    assert pred.shape == (batch, output_dim)
    assert hid.shape == (n_layers, batch, hidden_dim)
    assert cel.shape == (n_layers, batch, hidden_dim)
    assert jnp.allclose(pred, pred_r, atol=1e-4, rtol=1e-4)
    assert jnp.allclose(hid, hid_r, atol=1e-4, rtol=1e-4)
    assert jnp.allclose(cel, cel_r, atol=1e-4, rtol=1e-4)

    # ---- bf16 streamed weights (HBM-bandwidth variant): loose check. ----
    params16, dims16 = prepare_decoder_params(embedding, lstm_weights, w_fc, b_fc,
                                              weight_dtype=jnp.bfloat16, tile_v=128)
    pred16, hid16, cel16 = fwd(tokens, hidden0, cell0, params16, dims16)
    jax.block_until_ready((pred16, hid16, cel16))
    assert bool(jnp.all(jnp.isfinite(pred16)))
    assert jnp.allclose(pred16, pred_r, atol=0.25)
    assert jnp.allclose(hid16, hid_r, atol=0.1)
    assert jnp.allclose(cel16, cel_r, atol=0.1)

    print("KERNEL_OK")
</pallas_src>

<mosaic_0001>
module attributes {stable_mosaic.version = 11 : i64} {
  func.func @_decoder_step_kernel(%arg0: i32, %arg1: memref<8xi32, #tpu.memory_space<smem>>, %arg2: memref<200x128xf32, #tpu.memory_space<any>>, %arg3: memref<2x8x128xf32, #tpu.memory_space<vmem>>, %arg4: memref<2x8x128xf32, #tpu.memory_space<vmem>>, %arg5: memref<256x512xf32, #tpu.memory_space<vmem>>, %arg6: memref<1x512xf32, #tpu.memory_space<vmem>>, %arg7: memref<256x512xf32, #tpu.memory_space<vmem>>, %arg8: memref<1x512xf32, #tpu.memory_space<vmem>>, %arg9: memref<128x128xf32, #tpu.memory_space<vmem>>, %arg10: memref<1x128xf32, #tpu.memory_space<vmem>>, %arg11: memref<8x128xf32, #tpu.memory_space<vmem>>, %arg12: memref<2x8x128xf32, #tpu.memory_space<vmem>>, %arg13: memref<2x8x128xf32, #tpu.memory_space<vmem>>, %arg14: memref<8x128xf32, #tpu.memory_space<vmem>>, %arg15: memref<8x128xf32, #tpu.memory_space<vmem>>, %arg16: memref<8x!tpu.dma_semaphore, #tpu.memory_space<semaphore_mem>>) attributes {dimension_semantics = [#tpu.dimension_semantics<arbitrary>], iteration_bounds = array<i64: 2>, scalar_prefetch = 1 : i64, scratch_operands = 3 : i64, tpu.core_type = #tpu.core_type<tc>, window_params = [{}, {pipeline_mode = #tpu.pipeline_mode<synchronous>, transform_indices = @transform_1, window_bounds = array<i64: 2, 8, 128>}, {pipeline_mode = #tpu.pipeline_mode<synchronous>, transform_indices = @transform_2, window_bounds = array<i64: 2, 8, 128>}, {pipeline_mode = #tpu.pipeline_mode<synchronous>, transform_indices = @transform_3, window_bounds = array<i64: 256, 512>}, {pipeline_mode = #tpu.pipeline_mode<synchronous>, transform_indices = @transform_4, window_bounds = array<i64: 1, 512>}, {pipeline_mode = #tpu.pipeline_mode<synchronous>, transform_indices = @transform_5, window_bounds = array<i64: 256, 512>}, {pipeline_mode = #tpu.pipeline_mode<synchronous>, transform_indices = @transform_6, window_bounds = array<i64: 1, 512>}, {transform_indices = @transform_7, window_bounds = array<i64: 128, 128>}, {transform_indices = @transform_8, window_bounds = array<i64: 1, 128>}, {transform_indices = @transform_9, window_bounds = array<i64: 8, 128>}, {pipeline_mode = #tpu.pipeline_mode<synchronous>, transform_indices = @transform_10, window_bounds = array<i64: 2, 8, 128>}, {pipeline_mode = #tpu.pipeline_mode<synchronous>, transform_indices = @transform_11, window_bounds = array<i64: 2, 8, 128>}]} {
    %c0_i32 = arith.constant 0 : i32
    %0 = arith.cmpi eq, %arg0, %c0_i32 : i32
    %1 = arith.extui %0 : i1 to i32
    %c0_i32_0 = arith.constant 0 : i32
    %2 = arith.cmpi ne, %1, %c0_i32_0 : i32
    scf.if %2 {
      %c0_8 = arith.constant 0 : index
      %10 = memref.load %arg1[%c0_8] : memref<8xi32, #tpu.memory_space<smem>>
      %c0_i32_9 = arith.constant 0 : i32
      %c0_i32_10 = arith.constant 0 : i32
      %11 = tpu.memref_slice %arg2[%10, %c0_i32_10] : memref<200x128xf32, #tpu.memory_space<any>> -> memref<1x128xf32, #tpu.memory_space<any>>
      %c0_i32_11 = arith.constant 0 : i32
      %c0_i32_12 = arith.constant 0 : i32
      %12 = tpu.memref_slice %arg15[%c0_i32_11, %c0_i32_12] : memref<8x128xf32, #tpu.memory_space<vmem>> -> memref<1x128xf32, #tpu.memory_space<vmem>>
      %13 = tpu.memref_slice %arg16[%c0_i32_9] : memref<8x!tpu.dma_semaphore, #tpu.memory_space<semaphore_mem>> -> memref<1x!tpu.dma_semaphore, #tpu.memory_space<semaphore_mem>>
      %14 = tpu.memref_squeeze %13 : memref<1x!tpu.dma_semaphore, #tpu.memory_space<semaphore_mem>> -> memref<!tpu.dma_semaphore, #tpu.memory_space<semaphore_mem>>
      tpu.enqueue_dma source(%11 : memref<1x128xf32, #tpu.memory_space<any>>) target(%12 : memref<1x128xf32, #tpu.memory_space<vmem>>) target_semaphore(%14 : memref<!tpu.dma_semaphore, #tpu.memory_space<semaphore_mem>>)
      %c1 = arith.constant 1 : index
      %15 = memref.load %arg1[%c1] : memref<8xi32, #tpu.memory_space<smem>>
      %c1_i32 = arith.constant 1 : i32
      %c0_i32_13 = arith.constant 0 : i32
      %16 = tpu.memref_slice %arg2[%15, %c0_i32_13] : memref<200x128xf32, #tpu.memory_space<any>> -> memref<1x128xf32, #tpu.memory_space<any>>
      %c1_i32_14 = arith.constant 1 : i32
      %c0_i32_15 = arith.constant 0 : i32
      %17 = tpu.memref_slice %arg15[%c1_i32_14, %c0_i32_15] : memref<8x128xf32, #tpu.memory_space<vmem>> -> memref<1x128xf32, #tpu.memory_space<vmem>>
      %18 = tpu.memref_slice %arg16[%c1_i32] : memref<8x!tpu.dma_semaphore, #tpu.memory_space<semaphore_mem>> -> memref<1x!tpu.dma_semaphore, #tpu.memory_space<semaphore_mem>>
      %19 = tpu.memref_squeeze %18 : memref<1x!tpu.dma_semaphore, #tpu.memory_space<semaphore_mem>> -> memref<!tpu.dma_semaphore, #tpu.memory_space<semaphore_mem>>
      tpu.enqueue_dma source(%16 : memref<1x128xf32, #tpu.memory_space<any>>) target(%17 : memref<1x128xf32, #tpu.memory_space<vmem>>) target_semaphore(%19 : memref<!tpu.dma_semaphore, #tpu.memory_space<semaphore_mem>>)
      %c2 = arith.constant 2 : index
      %20 = memref.load %arg1[%c2] : memref<8xi32, #tpu.memory_space<smem>>
      %c2_i32 = arith.constant 2 : i32
      %c0_i32_16 = arith.constant 0 : i32
      %21 = tpu.memref_slice %arg2[%20, %c0_i32_16] : memref<200x128xf32, #tpu.memory_space<any>> -> memref<1x128xf32, #tpu.memory_space<any>>
      %c2_i32_17 = arith.constant 2 : i32
      %c0_i32_18 = arith.constant 0 : i32
      %22 = tpu.memref_slice %arg15[%c2_i32_17, %c0_i32_18] : memref<8x128xf32, #tpu.memory_space<vmem>> -> memref<1x128xf32, #tpu.memory_space<vmem>>
      %23 = tpu.memref_slice %arg16[%c2_i32] : memref<8x!tpu.dma_semaphore, #tpu.memory_space<semaphore_mem>> -> memref<1x!tpu.dma_semaphore, #tpu.memory_space<semaphore_mem>>
      %24 = tpu.memref_squeeze %23 : memref<1x!tpu.dma_semaphore, #tpu.memory_space<semaphore_mem>> -> memref<!tpu.dma_semaphore, #tpu.memory_space<semaphore_mem>>
      tpu.enqueue_dma source(%21 : memref<1x128xf32, #tpu.memory_space<any>>) target(%22 : memref<1x128xf32, #tpu.memory_space<vmem>>) target_semaphore(%24 : memref<!tpu.dma_semaphore, #tpu.memory_space<semaphore_mem>>)
      %c3 = arith.constant 3 : index
      %25 = memref.load %arg1[%c3] : memref<8xi32, #tpu.memory_space<smem>>
      %c3_i32 = arith.constant 3 : i32
      %c0_i32_19 = arith.constant 0 : i32
      %26 = tpu.memref_slice %arg2[%25, %c0_i32_19] : memref<200x128xf32, #tpu.memory_space<any>> -> memref<1x128xf32, #tpu.memory_space<any>>
      %c3_i32_20 = arith.constant 3 : i32
      %c0_i32_21 = arith.constant 0 : i32
      %27 = tpu.memref_slice %arg15[%c3_i32_20, %c0_i32_21] : memref<8x128xf32, #tpu.memory_space<vmem>> -> memref<1x128xf32, #tpu.memory_space<vmem>>
      %28 = tpu.memref_slice %arg16[%c3_i32] : memref<8x!tpu.dma_semaphore, #tpu.memory_space<semaphore_mem>> -> memref<1x!tpu.dma_semaphore, #tpu.memory_space<semaphore_mem>>
      %29 = tpu.memref_squeeze %28 : memref<1x!tpu.dma_semaphore, #tpu.memory_space<semaphore_mem>> -> memref<!tpu.dma_semaphore, #tpu.memory_space<semaphore_mem>>
      tpu.enqueue_dma source(%26 : memref<1x128xf32, #tpu.memory_space<any>>) target(%27 : memref<1x128xf32, #tpu.memory_space<vmem>>) target_semaphore(%29 : memref<!tpu.dma_semaphore, #tpu.memory_space<semaphore_mem>>)
      %c4 = arith.constant 4 : index
      %30 = memref.load %arg1[%c4] : memref<8xi32, #tpu.memory_space<smem>>
      %c4_i32 = arith.constant 4 : i32
      %c0_i32_22 = arith.constant 0 : i32
      %31 = tpu.memref_slice %arg2[%30, %c0_i32_22] : memref<200x128xf32, #tpu.memory_space<any>> -> memref<1x128xf32, #tpu.memory_space<any>>
      %c4_i32_23 = arith.constant 4 : i32
      %c0_i32_24 = arith.constant 0 : i32
      %32 = tpu.memref_slice %arg15[%c4_i32_23, %c0_i32_24] : memref<8x128xf32, #tpu.memory_space<vmem>> -> memref<1x128xf32, #tpu.memory_space<vmem>>
      %33 = tpu.memref_slice %arg16[%c4_i32] : memref<8x!tpu.dma_semaphore, #tpu.memory_space<semaphore_mem>> -> memref<1x!tpu.dma_semaphore, #tpu.memory_space<semaphore_mem>>
      %34 = tpu.memref_squeeze %33 : memref<1x!tpu.dma_semaphore, #tpu.memory_space<semaphore_mem>> -> memref<!tpu.dma_semaphore, #tpu.memory_space<semaphore_mem>>
      tpu.enqueue_dma source(%31 : memref<1x128xf32, #tpu.memory_space<any>>) target(%32 : memref<1x128xf32, #tpu.memory_space<vmem>>) target_semaphore(%34 : memref<!tpu.dma_semaphore, #tpu.memory_space<semaphore_mem>>)
      %c5 = arith.constant 5 : index
      %35 = memref.load %arg1[%c5] : memref<8xi32, #tpu.memory_space<smem>>
      %c5_i32 = arith.constant 5 : i32
      %c0_i32_25 = arith.constant 0 : i32
      %36 = tpu.memref_slice %arg2[%35, %c0_i32_25] : memref<200x128xf32, #tpu.memory_space<any>> -> memref<1x128xf32, #tpu.memory_space<any>>
      %c5_i32_26 = arith.constant 5 : i32
      %c0_i32_27 = arith.constant 0 : i32
      %37 = tpu.memref_slice %arg15[%c5_i32_26, %c0_i32_27] : memref<8x128xf32, #tpu.memory_space<vmem>> -> memref<1x128xf32, #tpu.memory_space<vmem>>
      %38 = tpu.memref_slice %arg16[%c5_i32] : memref<8x!tpu.dma_semaphore, #tpu.memory_space<semaphore_mem>> -> memref<1x!tpu.dma_semaphore, #tpu.memory_space<semaphore_mem>>
      %39 = tpu.memref_squeeze %38 : memref<1x!tpu.dma_semaphore, #tpu.memory_space<semaphore_mem>> -> memref<!tpu.dma_semaphore, #tpu.memory_space<semaphore_mem>>
      tpu.enqueue_dma source(%36 : memref<1x128xf32, #tpu.memory_space<any>>) target(%37 : memref<1x128xf32, #tpu.memory_space<vmem>>) target_semaphore(%39 : memref<!tpu.dma_semaphore, #tpu.memory_space<semaphore_mem>>)
      %c6 = arith.constant 6 : index
      %40 = memref.load %arg1[%c6] : memref<8xi32, #tpu.memory_space<smem>>
      %c6_i32 = arith.constant 6 : i32
      %c0_i32_28 = arith.constant 0 : i32
      %41 = tpu.memref_slice %arg2[%40, %c0_i32_28] : memref<200x128xf32, #tpu.memory_space<any>> -> memref<1x128xf32, #tpu.memory_space<any>>
      %c6_i32_29 = arith.constant 6 : i32
      %c0_i32_30 = arith.constant 0 : i32
      %42 = tpu.memref_slice %arg15[%c6_i32_29, %c0_i32_30] : memref<8x128xf32, #tpu.memory_space<vmem>> -> memref<1x128xf32, #tpu.memory_space<vmem>>
      %43 = tpu.memref_slice %arg16[%c6_i32] : memref<8x!tpu.dma_semaphore, #tpu.memory_space<semaphore_mem>> -> memref<1x!tpu.dma_semaphore, #tpu.memory_space<semaphore_mem>>
      %44 = tpu.memref_squeeze %43 : memref<1x!tpu.dma_semaphore, #tpu.memory_space<semaphore_mem>> -> memref<!tpu.dma_semaphore, #tpu.memory_space<semaphore_mem>>
      tpu.enqueue_dma source(%41 : memref<1x128xf32, #tpu.memory_space<any>>) target(%42 : memref<1x128xf32, #tpu.memory_space<vmem>>) target_semaphore(%44 : memref<!tpu.dma_semaphore, #tpu.memory_space<semaphore_mem>>)
      %c7 = arith.constant 7 : index
      %45 = memref.load %arg1[%c7] : memref<8xi32, #tpu.memory_space<smem>>
      %c7_i32 = arith.constant 7 : i32
      %c0_i32_31 = arith.constant 0 : i32
      %46 = tpu.memref_slice %arg2[%45, %c0_i32_31] : memref<200x128xf32, #tpu.memory_space<any>> -> memref<1x128xf32, #tpu.memory_space<any>>
      %c7_i32_32 = arith.constant 7 : i32
      %c0_i32_33 = arith.constant 0 : i32
      %47 = tpu.memref_slice %arg15[%c7_i32_32, %c0_i32_33] : memref<8x128xf32, #tpu.memory_space<vmem>> -> memref<1x128xf32, #tpu.memory_space<vmem>>
      %48 = tpu.memref_slice %arg16[%c7_i32] : memref<8x!tpu.dma_semaphore, #tpu.memory_space<semaphore_mem>> -> memref<1x!tpu.dma_semaphore, #tpu.memory_space<semaphore_mem>>
      %49 = tpu.memref_squeeze %48 : memref<1x!tpu.dma_semaphore, #tpu.memory_space<semaphore_mem>> -> memref<!tpu.dma_semaphore, #tpu.memory_space<semaphore_mem>>
      tpu.enqueue_dma source(%46 : memref<1x128xf32, #tpu.memory_space<any>>) target(%47 : memref<1x128xf32, #tpu.memory_space<vmem>>) target_semaphore(%49 : memref<!tpu.dma_semaphore, #tpu.memory_space<semaphore_mem>>)
      %c0_i32_34 = arith.constant 0 : i32
      %c0_i32_35 = arith.constant 0 : i32
      %50 = tpu.memref_slice %arg2[%10, %c0_i32_35] : memref<200x128xf32, #tpu.memory_space<any>> -> memref<1x128xf32, #tpu.memory_space<any>>
      %c0_i32_36 = arith.constant 0 : i32
      %c0_i32_37 = arith.constant 0 : i32
      %51 = tpu.memref_slice %arg15[%c0_i32_36, %c0_i32_37] : memref<8x128xf32, #tpu.memory_space<vmem>> -> memref<1x128xf32, #tpu.memory_space<vmem>>
      %52 = tpu.memref_slice %arg16[%c0_i32_34] : memref<8x!tpu.dma_semaphore, #tpu.memory_space<semaphore_mem>> -> memref<1x!tpu.dma_semaphore, #tpu.memory_space<semaphore_mem>>
      %53 = tpu.memref_squeeze %52 : memref<1x!tpu.dma_semaphore, #tpu.memory_space<semaphore_mem>> -> memref<!tpu.dma_semaphore, #tpu.memory_space<semaphore_mem>>
      tpu.wait_dma2 semaphore(%53 : memref<!tpu.dma_semaphore, #tpu.memory_space<semaphore_mem>>) src(%50 : memref<1x128xf32, #tpu.memory_space<any>>) dst(%51 : memref<1x128xf32, #tpu.memory_space<vmem>>)
      %c1_i32_38 = arith.constant 1 : i32
      %c0_i32_39 = arith.constant 0 : i32
      %54 = tpu.memref_slice %arg2[%15, %c0_i32_39] : memref<200x128xf32, #tpu.memory_space<any>> -> memref<1x128xf32, #tpu.memory_space<any>>
      %c1_i32_40 = arith.constant 1 : i32
      %c0_i32_41 = arith.constant 0 : i32
      %55 = tpu.memref_slice %arg15[%c1_i32_40, %c0_i32_41] : memref<8x128xf32, #tpu.memory_space<vmem>> -> memref<1x128xf32, #tpu.memory_space<vmem>>
      %56 = tpu.memref_slice %arg16[%c1_i32_38] : memref<8x!tpu.dma_semaphore, #tpu.memory_space<semaphore_mem>> -> memref<1x!tpu.dma_semaphore, #tpu.memory_space<semaphore_mem>>
      %57 = tpu.memref_squeeze %56 : memref<1x!tpu.dma_semaphore, #tpu.memory_space<semaphore_mem>> -> memref<!tpu.dma_semaphore, #tpu.memory_space<semaphore_mem>>
      tpu.wait_dma2 semaphore(%57 : memref<!tpu.dma_semaphore, #tpu.memory_space<semaphore_mem>>) src(%54 : memref<1x128xf32, #tpu.memory_space<any>>) dst(%55 : memref<1x128xf32, #tpu.memory_space<vmem>>)
      %c2_i32_42 = arith.constant 2 : i32
      %c0_i32_43 = arith.constant 0 : i32
      %58 = tpu.memref_slice %arg2[%20, %c0_i32_43] : memref<200x128xf32, #tpu.memory_space<any>> -> memref<1x128xf32, #tpu.memory_space<any>>
      %c2_i32_44 = arith.constant 2 : i32
      %c0_i32_45 = arith.constant 0 : i32
      %59 = tpu.memref_slice %arg15[%c2_i32_44, %c0_i32_45] : memref<8x128xf32, #tpu.memory_space<vmem>> -> memref<1x128xf32, #tpu.memory_space<vmem>>
      %60 = tpu.memref_slice %arg16[%c2_i32_42] : memref<8x!tpu.dma_semaphore, #tpu.memory_space<semaphore_mem>> -> memref<1x!tpu.dma_semaphore, #tpu.memory_space<semaphore_mem>>
      %61 = tpu.memref_squeeze %60 : memref<1x!tpu.dma_semaphore, #tpu.memory_space<semaphore_mem>> -> memref<!tpu.dma_semaphore, #tpu.memory_space<semaphore_mem>>
      tpu.wait_dma2 semaphore(%61 : memref<!tpu.dma_semaphore, #tpu.memory_space<semaphore_mem>>) src(%58 : memref<1x128xf32, #tpu.memory_space<any>>) dst(%59 : memref<1x128xf32, #tpu.memory_space<vmem>>)
      %c3_i32_46 = arith.constant 3 : i32
      %c0_i32_47 = arith.constant 0 : i32
      %62 = tpu.memref_slice %arg2[%25, %c0_i32_47] : memref<200x128xf32, #tpu.memory_space<any>> -> memref<1x128xf32, #tpu.memory_space<any>>
      %c3_i32_48 = arith.constant 3 : i32
      %c0_i32_49 = arith.constant 0 : i32
      %63 = tpu.memref_slice %arg15[%c3_i32_48, %c0_i32_49] : memref<8x128xf32, #tpu.memory_space<vmem>> -> memref<1x128xf32, #tpu.memory_space<vmem>>
      %64 = tpu.memref_slice %arg16[%c3_i32_46] : memref<8x!tpu.dma_semaphore, #tpu.memory_space<semaphore_mem>> -> memref<1x!tpu.dma_semaphore, #tpu.memory_space<semaphore_mem>>
      %65 = tpu.memref_squeeze %64 : memref<1x!tpu.dma_semaphore, #tpu.memory_space<semaphore_mem>> -> memref<!tpu.dma_semaphore, #tpu.memory_space<semaphore_mem>>
      tpu.wait_dma2 semaphore(%65 : memref<!tpu.dma_semaphore, #tpu.memory_space<semaphore_mem>>) src(%62 : memref<1x128xf32, #tpu.memory_space<any>>) dst(%63 : memref<1x128xf32, #tpu.memory_space<vmem>>)
      %c4_i32_50 = arith.constant 4 : i32
      %c0_i32_51 = arith.constant 0 : i32
      %66 = tpu.memref_slice %arg2[%30, %c0_i32_51] : memref<200x128xf32, #tpu.memory_space<any>> -> memref<1x128xf32, #tpu.memory_space<any>>
      %c4_i32_52 = arith.constant 4 : i32
      %c0_i32_53 = arith.constant 0 : i32
      %67 = tpu.memref_slice %arg15[%c4_i32_52, %c0_i32_53] : memref<8x128xf32, #tpu.memory_space<vmem>> -> memref<1x128xf32, #tpu.memory_space<vmem>>
      %68 = tpu.memref_slice %arg16[%c4_i32_50] : memref<8x!tpu.dma_semaphore, #tpu.memory_space<semaphore_mem>> -> memref<1x!tpu.dma_semaphore, #tpu.memory_space<semaphore_mem>>
      %69 = tpu.memref_squeeze %68 : memref<1x!tpu.dma_semaphore, #tpu.memory_space<semaphore_mem>> -> memref<!tpu.dma_semaphore, #tpu.memory_space<semaphore_mem>>
      tpu.wait_dma2 semaphore(%69 : memref<!tpu.dma_semaphore, #tpu.memory_space<semaphore_mem>>) src(%66 : memref<1x128xf32, #tpu.memory_space<any>>) dst(%67 : memref<1x128xf32, #tpu.memory_space<vmem>>)
      %c5_i32_54 = arith.constant 5 : i32
      %c0_i32_55 = arith.constant 0 : i32
      %70 = tpu.memref_slice %arg2[%35, %c0_i32_55] : memref<200x128xf32, #tpu.memory_space<any>> -> memref<1x128xf32, #tpu.memory_space<any>>
      %c5_i32_56 = arith.constant 5 : i32
      %c0_i32_57 = arith.constant 0 : i32
      %71 = tpu.memref_slice %arg15[%c5_i32_56, %c0_i32_57] : memref<8x128xf32, #tpu.memory_space<vmem>> -> memref<1x128xf32, #tpu.memory_space<vmem>>
      %72 = tpu.memref_slice %arg16[%c5_i32_54] : memref<8x!tpu.dma_semaphore, #tpu.memory_space<semaphore_mem>> -> memref<1x!tpu.dma_semaphore, #tpu.memory_space<semaphore_mem>>
      %73 = tpu.memref_squeeze %72 : memref<1x!tpu.dma_semaphore, #tpu.memory_space<semaphore_mem>> -> memref<!tpu.dma_semaphore, #tpu.memory_space<semaphore_mem>>
      tpu.wait_dma2 semaphore(%73 : memref<!tpu.dma_semaphore, #tpu.memory_space<semaphore_mem>>) src(%70 : memref<1x128xf32, #tpu.memory_space<any>>) dst(%71 : memref<1x128xf32, #tpu.memory_space<vmem>>)
      %c6_i32_58 = arith.constant 6 : i32
      %c0_i32_59 = arith.constant 0 : i32
      %74 = tpu.memref_slice %arg2[%40, %c0_i32_59] : memref<200x128xf32, #tpu.memory_space<any>> -> memref<1x128xf32, #tpu.memory_space<any>>
      %c6_i32_60 = arith.constant 6 : i32
      %c0_i32_61 = arith.constant 0 : i32
      %75 = tpu.memref_slice %arg15[%c6_i32_60, %c0_i32_61] : memref<8x128xf32, #tpu.memory_space<vmem>> -> memref<1x128xf32, #tpu.memory_space<vmem>>
      %76 = tpu.memref_slice %arg16[%c6_i32_58] : memref<8x!tpu.dma_semaphore, #tpu.memory_space<semaphore_mem>> -> memref<1x!tpu.dma_semaphore, #tpu.memory_space<semaphore_mem>>
      %77 = tpu.memref_squeeze %76 : memref<1x!tpu.dma_semaphore, #tpu.memory_space<semaphore_mem>> -> memref<!tpu.dma_semaphore, #tpu.memory_space<semaphore_mem>>
      tpu.wait_dma2 semaphore(%77 : memref<!tpu.dma_semaphore, #tpu.memory_space<semaphore_mem>>) src(%74 : memref<1x128xf32, #tpu.memory_space<any>>) dst(%75 : memref<1x128xf32, #tpu.memory_space<vmem>>)
      %c7_i32_62 = arith.constant 7 : i32
      %c0_i32_63 = arith.constant 0 : i32
      %78 = tpu.memref_slice %arg2[%45, %c0_i32_63] : memref<200x128xf32, #tpu.memory_space<any>> -> memref<1x128xf32, #tpu.memory_space<any>>
      %c7_i32_64 = arith.constant 7 : i32
      %c0_i32_65 = arith.constant 0 : i32
      %79 = tpu.memref_slice %arg15[%c7_i32_64, %c0_i32_65] : memref<8x128xf32, #tpu.memory_space<vmem>> -> memref<1x128xf32, #tpu.memory_space<vmem>>
      %80 = tpu.memref_slice %arg16[%c7_i32_62] : memref<8x!tpu.dma_semaphore, #tpu.memory_space<semaphore_mem>> -> memref<1x!tpu.dma_semaphore, #tpu.memory_space<semaphore_mem>>
      %81 = tpu.memref_squeeze %80 : memref<1x!tpu.dma_semaphore, #tpu.memory_space<semaphore_mem>> -> memref<!tpu.dma_semaphore, #tpu.memory_space<semaphore_mem>>
      tpu.wait_dma2 semaphore(%81 : memref<!tpu.dma_semaphore, #tpu.memory_space<semaphore_mem>>) src(%78 : memref<1x128xf32, #tpu.memory_space<any>>) dst(%79 : memref<1x128xf32, #tpu.memory_space<vmem>>)
      %c0_66 = arith.constant 0 : index
      %c0_67 = arith.constant 0 : index
      %82 = vector.load %arg15[%c0_66, %c0_67] : memref<8x128xf32, #tpu.memory_space<vmem>>, vector<8x128xf32>
      %c0_68 = arith.constant 0 : index
      %c0_69 = arith.constant 0 : index
      %c0_70 = arith.constant 0 : index
      %83 = vector.load %arg3[%c0_68, %c0_69, %c0_70] : memref<2x8x128xf32, #tpu.memory_space<vmem>>, vector<1x8x128xf32>
      %84 = vector.shape_cast %83 : vector<1x8x128xf32> to vector<8x128xf32>
      %c0_71 = arith.constant 0 : index
      %c0_72 = arith.constant 0 : index
      %c0_73 = arith.constant 0 : index
      %85 = vector.load %arg4[%c0_71, %c0_72, %c0_73] : memref<2x8x128xf32, #tpu.memory_space<vmem>>, vector<1x8x128xf32>
      %86 = vector.shape_cast %85 : vector<1x8x128xf32> to vector<8x128xf32>
      %87 = tpu.concatenate %82, %84 in 1 : vector<8x128xf32>, vector<8x128xf32> -> vector<8x256xf32>
      %c0_74 = arith.constant 0 : index
      %c0_75 = arith.constant 0 : index
      %88 = vector.load %arg5[%c0_74, %c0_75] : memref<256x512xf32, #tpu.memory_space<vmem>>, vector<256x512xf32>
      %cst_76 = arith.constant dense<0.000000e+00> : vector<8x512xf32>
      %89 = tpu.matmul %87, %88, %cst_76 {dimension_numbers = #tpu.dot_dimension_numbers<[1], [0], [0], [1], [0, 0, 1, 1], [], []>} : vector<8x256xf32>, vector<256x512xf32>, vector<8x512xf32> -> vector<8x512xf32>
      %c0_77 = arith.constant 0 : index
      %c0_78 = arith.constant 0 : index
      %90 = vector.load %arg6[%c0_77, %c0_78] : memref<1x512xf32, #tpu.memory_space<vmem>>, vector<1x512xf32>
      %91 = vector.broadcast %90 : vector<1x512xf32> to vector<8x512xf32>
      %92 = arith.addf %89, %91 : vector<8x512xf32>
      %93 = vector.extract_strided_slice %92 {offsets = [0, 0], sizes = [8, 128], strides = [1, 1]} : vector<8x512xf32> to vector<8x128xf32>
      %94 = arith.negf %93 : vector<8x128xf32>
      %95 = math.exp %94 : vector<8x128xf32>
      %cst_79 = arith.constant 1.000000e+00 : f32
      %96 = vector.broadcast %cst_79 : f32 to vector<8x128xf32>
      %97 = arith.addf %96, %95 : vector<8x128xf32>
      %98 = arith.divf %96, %97 : vector<8x128xf32>
      %99 = vector.extract_strided_slice %92 {offsets = [0, 128], sizes = [8, 128], strides = [1, 1]} : vector<8x512xf32> to vector<8x128xf32>
      %100 = arith.negf %99 : vector<8x128xf32>
      %101 = math.exp %100 : vector<8x128xf32>
      %cst_80 = arith.constant 1.000000e+00 : f32
      %102 = vector.broadcast %cst_80 : f32 to vector<8x128xf32>
      %103 = arith.addf %102, %101 : vector<8x128xf32>
      %104 = arith.divf %102, %103 : vector<8x128xf32>
      %105 = vector.extract_strided_slice %92 {offsets = [0, 256], sizes = [8, 128], strides = [1, 1]} : vector<8x512xf32> to vector<8x128xf32>
      %106 = math.tanh %105 : vector<8x128xf32>
      %107 = vector.extract_strided_slice %92 {offsets = [0, 384], sizes = [8, 128], strides = [1, 1]} : vector<8x512xf32> to vector<8x128xf32>
      %108 = arith.negf %107 : vector<8x128xf32>
      %109 = math.exp %108 : vector<8x128xf32>
      %cst_81 = arith.constant 1.000000e+00 : f32
      %110 = vector.broadcast %cst_81 : f32 to vector<8x128xf32>
      %111 = arith.addf %110, %109 : vector<8x128xf32>
      %112 = arith.divf %110, %111 : vector<8x128xf32>
      %113 = arith.mulf %104, %86 : vector<8x128xf32>
      %114 = arith.mulf %98, %106 : vector<8x128xf32>
      %115 = arith.addf %113, %114 : vector<8x128xf32>
      %116 = math.tanh %115 : vector<8x128xf32>
      %117 = arith.mulf %112, %116 : vector<8x128xf32>
      %c0_82 = arith.constant 0 : index
      %c0_83 = arith.constant 0 : index
      %c0_84 = arith.constant 0 : index
      %118 = vector.load %arg12[%c0_82, %c0_83, %c0_84] : memref<2x8x128xf32, #tpu.memory_space<vmem>>, vector<1x8x128xf32>
      %119 = vector.shape_cast %118 : vector<1x8x128xf32> to vector<8x128xf32>
      %120 = vector.shape_cast %117 : vector<8x128xf32> to vector<1x8x128xf32>
      tpu.vector_store %arg12[%c0_82, %c0_83, %c0_84], %120 {strides = array<i32>} : memref<2x8x128xf32, #tpu.memory_space<vmem>>, vector<1x8x128xf32>,
      %c0_85 = arith.constant 0 : index
      %c0_86 = arith.constant 0 : index
      %c0_87 = arith.constant 0 : index
      %121 = vector.load %arg13[%c0_85, %c0_86, %c0_87] : memref<2x8x128xf32, #tpu.memory_space<vmem>>, vector<1x8x128xf32>
      %122 = vector.shape_cast %121 : vector<1x8x128xf32> to vector<8x128xf32>
      %123 = vector.shape_cast %115 : vector<8x128xf32> to vector<1x8x128xf32>
      tpu.vector_store %arg13[%c0_85, %c0_86, %c0_87], %123 {strides = array<i32>} : memref<2x8x128xf32, #tpu.memory_space<vmem>>, vector<1x8x128xf32>,
      %c1_88 = arith.constant 1 : index
      %c0_89 = arith.constant 0 : index
      %c0_90 = arith.constant 0 : index
      %124 = vector.load %arg3[%c1_88, %c0_89, %c0_90] : memref<2x8x128xf32, #tpu.memory_space<vmem>>, vector<1x8x128xf32>
      %125 = vector.shape_cast %124 : vector<1x8x128xf32> to vector<8x128xf32>
      %c1_91 = arith.constant 1 : index
      %c0_92 = arith.constant 0 : index
      %c0_93 = arith.constant 0 : index
      %126 = vector.load %arg4[%c1_91, %c0_92, %c0_93] : memref<2x8x128xf32, #tpu.memory_space<vmem>>, vector<1x8x128xf32>
      %127 = vector.shape_cast %126 : vector<1x8x128xf32> to vector<8x128xf32>
      %128 = tpu.concatenate %117, %125 in 1 : vector<8x128xf32>, vector<8x128xf32> -> vector<8x256xf32>
      %c0_94 = arith.constant 0 : index
      %c0_95 = arith.constant 0 : index
      %129 = vector.load %arg7[%c0_94, %c0_95] : memref<256x512xf32, #tpu.memory_space<vmem>>, vector<256x512xf32>
      %cst_96 = arith.constant dense<0.000000e+00> : vector<8x512xf32>
      %130 = tpu.matmul %128, %129, %cst_96 {dimension_numbers = #tpu.dot_dimension_numbers<[1], [0], [0], [1], [0, 0, 1, 1], [], []>} : vector<8x256xf32>, vector<256x512xf32>, vector<8x512xf32> -> vector<8x512xf32>
      %c0_97 = arith.constant 0 : index
      %c0_98 = arith.constant 0 : index
      %131 = vector.load %arg8[%c0_97, %c0_98] : memref<1x512xf32, #tpu.memory_space<vmem>>, vector<1x512xf32>
      %132 = vector.broadcast %131 : vector<1x512xf32> to vector<8x512xf32>
      %133 = arith.addf %130, %132 : vector<8x512xf32>
      %134 = vector.extract_strided_slice %133 {offsets = [0, 0], sizes = [8, 128], strides = [1, 1]} : vector<8x512xf32> to vector<8x128xf32>
      %135 = arith.negf %134 : vector<8x128xf32>
      %136 = math.exp %135 : vector<8x128xf32>
      %cst_99 = arith.constant 1.000000e+00 : f32
      %137 = vector.broadcast %cst_99 : f32 to vector<8x128xf32>
      %138 = arith.addf %137, %136 : vector<8x128xf32>
      %139 = arith.divf %137, %138 : vector<8x128xf32>
      %140 = vector.extract_strided_slice %133 {offsets = [0, 128], sizes = [8, 128], strides = [1, 1]} : vector<8x512xf32> to vector<8x128xf32>
      %141 = arith.negf %140 : vector<8x128xf32>
      %142 = math.exp %141 : vector<8x128xf32>
      %cst_100 = arith.constant 1.000000e+00 : f32
      %143 = vector.broadcast %cst_100 : f32 to vector<8x128xf32>
      %144 = arith.addf %143, %142 : vector<8x128xf32>
      %145 = arith.divf %143, %144 : vector<8x128xf32>
      %146 = vector.extract_strided_slice %133 {offsets = [0, 256], sizes = [8, 128], strides = [1, 1]} : vector<8x512xf32> to vector<8x128xf32>
      %147 = math.tanh %146 : vector<8x128xf32>
      %148 = vector.extract_strided_slice %133 {offsets = [0, 384], sizes = [8, 128], strides = [1, 1]} : vector<8x512xf32> to vector<8x128xf32>
      %149 = arith.negf %148 : vector<8x128xf32>
      %150 = math.exp %149 : vector<8x128xf32>
      %cst_101 = arith.constant 1.000000e+00 : f32
      %151 = vector.broadcast %cst_101 : f32 to vector<8x128xf32>
      %152 = arith.addf %151, %150 : vector<8x128xf32>
      %153 = arith.divf %151, %152 : vector<8x128xf32>
      %154 = arith.mulf %145, %127 : vector<8x128xf32>
      %155 = arith.mulf %139, %147 : vector<8x128xf32>
      %156 = arith.addf %154, %155 : vector<8x128xf32>
      %157 = math.tanh %156 : vector<8x128xf32>
      %158 = arith.mulf %153, %157 : vector<8x128xf32>
      %c1_102 = arith.constant 1 : index
      %c0_103 = arith.constant 0 : index
      %c0_104 = arith.constant 0 : index
      %159 = vector.load %arg12[%c1_102, %c0_103, %c0_104] : memref<2x8x128xf32, #tpu.memory_space<vmem>>, vector<1x8x128xf32>
      %160 = vector.shape_cast %159 : vector<1x8x128xf32> to vector<8x128xf32>
      %161 = vector.shape_cast %158 : vector<8x128xf32> to vector<1x8x128xf32>
      tpu.vector_store %arg12[%c1_102, %c0_103, %c0_104], %161 {strides = array<i32>} : memref<2x8x128xf32, #tpu.memory_space<vmem>>, vector<1x8x128xf32>,
      %c1_105 = arith.constant 1 : index
      %c0_106 = arith.constant 0 : index
      %c0_107 = arith.constant 0 : index
      %162 = vector.load %arg13[%c1_105, %c0_106, %c0_107] : memref<2x8x128xf32, #tpu.memory_space<vmem>>, vector<1x8x128xf32>
      %163 = vector.shape_cast %162 : vector<1x8x128xf32> to vector<8x128xf32>
      %164 = vector.shape_cast %156 : vector<8x128xf32> to vector<1x8x128xf32>
      tpu.vector_store %arg13[%c1_105, %c0_106, %c0_107], %164 {strides = array<i32>} : memref<2x8x128xf32, #tpu.memory_space<vmem>>, vector<1x8x128xf32>,
      %c0_108 = arith.constant 0 : index
      %c0_109 = arith.constant 0 : index
      %165 = vector.load %arg14[%c0_108, %c0_109] : memref<8x128xf32, #tpu.memory_space<vmem>>, vector<8x128xf32>
      tpu.vector_store %arg14[%c0_108, %c0_109], %158 {strides = array<i32>} : memref<8x128xf32, #tpu.memory_space<vmem>>, vector<8x128xf32>,
    } else {
    }
    %c0 = arith.constant 0 : index
    %c0_1 = arith.constant 0 : index
    %3 = vector.load %arg14[%c0, %c0_1] : memref<8x128xf32, #tpu.memory_space<vmem>>, vector<8x128xf32>
    %c0_2 = arith.constant 0 : index
    %c0_3 = arith.constant 0 : index
    %4 = vector.load %arg9[%c0_2, %c0_3] : memref<128x128xf32, #tpu.memory_space<vmem>>, vector<128x128xf32>
    %cst = arith.constant dense<0.000000e+00> : vector<8x128xf32>
    %5 = tpu.matmul %3, %4, %cst {dimension_numbers = #tpu.dot_dimension_numbers<[1], [0], [0], [1], [0, 0, 1, 1], [], []>} : vector<8x128xf32>, vector<128x128xf32>, vector<8x128xf32> -> vector<8x128xf32>
    %c0_4 = arith.constant 0 : index
    %c0_5 = arith.constant 0 : index
    %6 = vector.load %arg10[%c0_4, %c0_5] : memref<1x128xf32, #tpu.memory_space<vmem>>, vector<1x128xf32>
    %7 = vector.broadcast %6 : vector<1x128xf32> to vector<8x128xf32>
    %8 = arith.addf %5, %7 : vector<8x128xf32>
    %c0_6 = arith.constant 0 : index
    %c0_7 = arith.constant 0 : index
    %9 = vector.load %arg11[%c0_6, %c0_7] : memref<8x128xf32, #tpu.memory_space<vmem>>, vector<8x128xf32>
    tpu.vector_store %arg11[%c0_6, %c0_7], %8 {strides = array<i32>} : memref<8x128xf32, #tpu.memory_space<vmem>>, vector<8x128xf32>,
    return
  }
  func.func @transform_1(%arg0: i32, %arg1: memref<8xi32, #tpu.memory_space<smem>>) -> (i32, i32, i32) {
    %c0_i32 = arith.constant 0 : i32
    %c0_i32_0 = arith.constant 0 : i32
    %c0_i32_1 = arith.constant 0 : i32
    %c0_i32_2 = arith.constant 0 : i32
    return %c0_i32, %c0_i32_0, %c0_i32_1 : i32, i32, i32
  }
  func.func @transform_2(%arg0: i32, %arg1: memref<8xi32, #tpu.memory_space<smem>>) -> (i32, i32, i32) {
    %c0_i32 = arith.constant 0 : i32
    %c0_i32_0 = arith.constant 0 : i32
    %c0_i32_1 = arith.constant 0 : i32
    %c0_i32_2 = arith.constant 0 : i32
    return %c0_i32, %c0_i32_0, %c0_i32_1 : i32, i32, i32
  }
  func.func @transform_3(%arg0: i32, %arg1: memref<8xi32, #tpu.memory_space<smem>>) -> (i32, i32) {
    %c0_i32 = arith.constant 0 : i32
    %c0_i32_0 = arith.constant 0 : i32
    %c0_i32_1 = arith.constant 0 : i32
    return %c0_i32, %c0_i32_0 : i32, i32
  }
  func.func @transform_4(%arg0: i32, %arg1: memref<8xi32, #tpu.memory_space<smem>>) -> (i32, i32) {
    %c0_i32 = arith.constant 0 : i32
    %c0_i32_0 = arith.constant 0 : i32
    %c0_i32_1 = arith.constant 0 : i32
    return %c0_i32, %c0_i32_0 : i32, i32
  }
  func.func @transform_5(%arg0: i32, %arg1: memref<8xi32, #tpu.memory_space<smem>>) -> (i32, i32) {
    %c0_i32 = arith.constant 0 : i32
    %c0_i32_0 = arith.constant 0 : i32
    %c0_i32_1 = arith.constant 0 : i32
    return %c0_i32, %c0_i32_0 : i32, i32
  }
  func.func @transform_6(%arg0: i32, %arg1: memref<8xi32, #tpu.memory_space<smem>>) -> (i32, i32) {
    %c0_i32 = arith.constant 0 : i32
    %c0_i32_0 = arith.constant 0 : i32
    %c0_i32_1 = arith.constant 0 : i32
    return %c0_i32, %c0_i32_0 : i32, i32
  }
  func.func @transform_7(%arg0: i32, %arg1: memref<8xi32, #tpu.memory_space<smem>>) -> (i32, i32) {
    %c0_i32 = arith.constant 0 : i32
    %c0_i32_0 = arith.constant 0 : i32
    return %c0_i32, %arg0 : i32, i32
  }
  func.func @transform_8(%arg0: i32, %arg1: memref<8xi32, #tpu.memory_space<smem>>) -> (i32, i32) {
    %c0_i32 = arith.constant 0 : i32
    %c0_i32_0 = arith.constant 0 : i32
    return %c0_i32, %arg0 : i32, i32
  }
  func.func @transform_9(%arg0: i32, %arg1: memref<8xi32, #tpu.memory_space<smem>>) -> (i32, i32) {
    %c0_i32 = arith.constant 0 : i32
    %c0_i32_0 = arith.constant 0 : i32
    return %c0_i32, %arg0 : i32, i32
  }
  func.func @transform_10(%arg0: i32, %arg1: memref<8xi32, #tpu.memory_space<smem>>) -> (i32, i32, i32) {
    %c0_i32 = arith.constant 0 : i32
    %c0_i32_0 = arith.constant 0 : i32
    %c0_i32_1 = arith.constant 0 : i32
    %c0_i32_2 = arith.constant 0 : i32
    return %c0_i32, %c0_i32_0, %c0_i32_1 : i32, i32, i32
  }
  func.func @transform_11(%arg0: i32, %arg1: memref<8xi32, #tpu.memory_space<smem>>) -> (i32, i32, i32) {
    %c0_i32 = arith.constant 0 : i32
    %c0_i32_0 = arith.constant 0 : i32
    %c0_i32_1 = arith.constant 0 : i32
    %c0_i32_2 = arith.constant 0 : i32
    return %c0_i32, %c0_i32_0, %c0_i32_1 : i32, i32, i32
  }
}

</mosaic_0001>

<bundles_post_ra>
// kernel: decoder_forward.1
= control target key start
LH: loop header
LB: loop body
LE: loop exit
PB: predicated region body
PF: predicated region fallthrough
CT: control target
= control target key end

     0   :  { %s2797_s0 = inlined_call_operand.vmem [shape: s32[8], index: 0, kind: input, shape index: {}]   ;;  %s2798_s1 = inlined_call_operand.hbm [shape: f32[200,128], index: 1, kind: input, shape index: {}]   ;;  %s2799_s2 = inlined_call_operand.vmem [shape: f32[2,8,128], index: 2, kind: input, shape index: {}]   ;;  %s2800_s3 = inlined_call_operand.vmem [shape: f32[2,8,128], index: 3, kind: input, shape index: {}]   ;;  %s2801_s4 = inlined_call_operand.hbm [shape: f32[256,512], index: 4, kind: input, shape index: {}]   ;;  %s2802_s5 = inlined_call_operand.vmem [shape: f32[1,512], index: 5, kind: input, shape index: {}]   ;;  %s2803_s6 = inlined_call_operand.hbm [shape: f32[256,512], index: 6, kind: input, shape index: {}]   ;;  %s2804_s7 = inlined_call_operand.vmem [shape: f32[1,512], index: 7, kind: input, shape index: {}]   ;;  %s2805_s8 = inlined_call_operand.hbm [shape: f32[128,256], index: 8, kind: input, shape index: {}]   ;;  %s2806_s9 = inlined_call_operand.vmem [shape: f32[1,256], index: 9, kind: input, shape index: {}]   ;;  %s2807_s10 = inlined_call_operand.vmem [shape: f32[8,256], index: 10, kind: output, shape index: {0}]   ;;  %s2808_s11 = inlined_call_operand.vmem [shape: f32[2,8,128], index: 11, kind: output, shape index: {1}]   ;;  %s2809_s12 = inlined_call_operand.vmem [shape: f32[2,8,128], index: 12, kind: output, shape index: {2}]  }
   0x1   :  { %2818 = sst [smem:[#allocation44_spill]] %s2801_s4  ;;  %s18_s23 = sshll.u32 %s2797_s0, 4  ;;  %s19_s23 = int_to_ptr.vmem [resolvable:$true] %s18_s23 }
   0x2   :  { %2819 = sst [smem:[#allocation45_spill]] %s2803_s6  ;;  %s1975_s24 = scalar_lea.vmem %s19_s23, 16 }
   0x3   :  { %2820 = sst [smem:[#allocation46_spill]] %s2804_s7  ;;  %p1976_p0 = scmp.ne.s32.totalorder %s19_s23, %s1975_s24 }
   0x4   :  { %2821 = sst [smem:[#allocation47_spill]] %s2808_s11  ;;  %p1980_p1 = scmp.lt.s32.totalorder %s19_s23, %s19_s23 }
   0x5   :  { %2822 = sst [smem:[#allocation48_spill]] %s2809_s12  ;;  %p1981_p2 = scmp.lt.s32.totalorder %s1975_s24, %s1975_s24 }
   0x7   :  { %p1982_p3 = por %p1981_p2, %p1980_p1 }
   0x9   :  { %p1983_p4 = pnand %p1982_p3, %p1976_p0 }
   0xb   :  { %1986 = shalt.err (!%p1983_p4)  }
   0xc   :  { %s2327_s25 = smov [#allocation6]  }
   0xd   :  { %21 = dma.vmem_to_smem %s19_s23, 16, %s2327_s25, [#allocation5] }
   0xe   :  { %2281 = dma.done.wait [#allocation5], 16 }
   0xf   :  { %2282 = vsyncadd [#allocation5], 4294967280 }
  0x10   :  { %23 = sfence }
  0x11   :  { %24 = vsyncpa [#allocation8], 0 }
  0x12   :  { %25 = vsyncpa [#allocation10], 0  ;;  %s2415_s26 = smov 0   ;;  %s2417_s27 = smov 0  }
  0x13   :  { %s2419_s0 = smov 0   ;;  %s2421_s28 = smov 0  }
  0x14 LB: > { %s2434_s29 = sadd.s32 4294967295, %s2325_s28   ;;  %s2437_s30 = sadd.s32 1, %s2325_s28   ;;  %s2325_s28 = sphi %s2421_s28, %s2845_s28   ;;  %s2321_s0 = sphi %s2419_s0, %s2849_s0   ;;  %s2317_s27 = sphi %s2417_s27, %s2848_s27   ;;  %s2313_s26 = sphi %s2415_s26, %s2847_s26  }
  0x15   : > { %2823 = sst [smem:[#allocation42_spill]] %s2437_s30  ;;  %s161_s13 = ssub.s32 %s2325_s28, %s2437_s30 }
  0x16   : > { %s164_s14 = sadd.s32 1, %s2321_s0  ;;  %p162_p5 = scmp.eq.s32.totalorder %s161_s13, 0 }
  0x17   : > { %p171_p6 = scmp.ne.s32.totalorder %s2321_s0, %s2317_s27  ;;  %p172_p7 = scmp.eq.s32.totalorder %s2325_s28, 0 }
  0x18   : > { %p177_p8 = scmp.ne.s32.totalorder %s2317_s27, %s2313_s26  ;;  %p2810_p10 = scmp.eq.s32.totalorder %s2434_s29, 0 }
  0x19   : > { %s2447_s15 = scalar_select %p162_p5, %s2321_s0, %s164_s14  }
  0x1a   : > { %p2449_p9 = por %p172_p7, %p171_p6  ;;  %p1486_p11 = scmp.ge.s32.totalorder %s2325_s28, 1 }
  0x1b   : > { %2824 = sst [smem:[#allocation43_spill]] %s2447_s15  ;;  %p282_p12 = scmp.lt.s32.totalorder %s2325_s28, 3 }
  0x1c   : > { %p2458_p13 = por %p2810_p10, %p177_p8  ;;  %s2328_s19 = smov [#allocation7]  }
  0x1d   : > { %p2463_p1 = pnand %p1486_p11, %p282_p12  ;;  %s300_s20 = sshll.u32 %s2328_s19, 4  ;;  %s301_s20 = int_to_ptr.vmem [resolvable:$true] %s300_s20 }
  0x1e   : > { %s2826_s17 = scalar_select %p2458_p13, 1, 0 }
  0x1f   : > { %s2827_s18 = scalar_select %p2463_p1, 1, 0 }
  0x20   : > { %p1876_p2 = pneg %p2463_p1  ;;  %p1889_p4 = scmp.lt.s32.totalorder %s2325_s28, 2 }
  0x21   : > { %s2830_s4 = sld [smem:[#allocation44_spill]] }
  0x22   : > { %p2471_p3 = pnand %p1876_p2, %p2810_p10  ;;  %p2479_p5 = pnand %p1889_p4, %p2449_p9 }
  0x24   : > { %s2829_s23 = scalar_select %p2479_p5, 1, 0 }
  0x25   : > { %p1989_p7 = pneg %p2471_p3 }
  0x27   : > { %s1987_s26 = scalar_lea.hbm %s2830_s4, 16384 }
  0x28   : > { %p1988_p6 = scmp.ne.s32.totalorder %s2830_s4, %s1987_s26  ;;  %p1994_p9 = scmp.lt.u32.totalorder %s1987_s26, %s2830_s4 }
  0x2a   : > { %p1990_p8 = pnand %p1989_p7, %p1988_p6 }
  0x2c   : > { %p1991_p11 = pneg %p1990_p8 }
  0x2e   : > { %p1996_p12 = pnand %p1994_p9, %p1991_p11 }
  0x30   : > { %1999 = shalt.err (!%p1996_p12)
}
  0x31   : > { %s2000_s22 = scalar_lea.vmem %s301_s20, 16384  ;;  %p2008_p10 = scmp.lt.s32.totalorder %s301_s20, %s301_s20 }
  0x32   : > { %p2001_p2 = scmp.ne.s32.totalorder %s301_s20, %s2000_s22  ;;  %p2009_p13 = scmp.lt.s32.totalorder %s2000_s22, %s2000_s22 }
  0x34   : > { %p2003_p4 = pnand %p2001_p2, %p1989_p7  ;;  %p2010_p1 = por %p2009_p13, %p2008_p10 }
  0x36   : > { %p2004_p0 = pneg %p2003_p4 }
  0x38   : > { %p2011_p5 = pnand %p2010_p1, %p2004_p0 }
  0x3a   : > { %2014 = shalt.err (!%p2011_p5)
}
  0x3b   : > { %s2329_s24 = smov 512   ;;  %s2330_s25 = smov 32  }
  0x3c   : > { %1879 = dma.hbm_to_vmem [thread:$0]  (!%p2471_p3), %s2830_s4, 16384, %s301_s20, [#allocation8], %s2329_s24, %s2329_s24, %s2330_s25  }
  0x3d   : > { %s2331_s14 = smov [#allocation9]   ;;  %s2831_s6 = sld [smem:[#allocation45_spill]] }
  0x3e   : > { %s316_s19 = sshll.u32 %s2331_s14, 4  ;;  %s317_s19 = int_to_ptr.vmem [resolvable:$true] %s316_s19 }
  0x43   : > { %s2015_s30 = scalar_lea.hbm %s2831_s6, 16384 }
  0x44   : > { %p2016_p10 = scmp.ne.s32.totalorder %s2831_s6, %s2015_s30  ;;  %p2022_p1 = scmp.lt.u32.totalorder %s2015_s30, %s2831_s6 }
  0x46   : > { %p2018_p13 = pnand %p2016_p10, %p1989_p7 }
  0x48   : > { %p2019_p0 = pneg %p2018_p13 }
  0x4a   : > { %p2024_p5 = pnand %p2022_p1, %p2019_p0 }
  0x4c   : > { %2027 = shalt.err (!%p2024_p5)
}
  0x4d   : > { %s2028_s20 = scalar_lea.vmem %s317_s19, 16384  ;;  %p2036_p9 = scmp.lt.s32.totalorder %s317_s19, %s317_s19 }
  0x4e   : > { %p2029_p6 = scmp.ne.s32.totalorder %s317_s19, %s2028_s20  ;;  %p2037_p12 = scmp.lt.s32.totalorder %s2028_s20, %s2028_s20 }
  0x50   : > { %p2031_p8 = pnand %p2029_p6, %p1989_p7  ;;  %p2038_p2 = por %p2037_p12, %p2036_p9 }
  0x52   : > { %p2032_p11 = pneg %p2031_p8 }
  0x54   : > { %p2039_p4 = pnand %p2038_p2, %p2032_p11 }
  0x56   : > { %2042 = shalt.err (!%p2039_p4)
}
  0x57   : > { %1882 = dma.hbm_to_vmem [thread:$0]  (!%p2471_p3), %s2831_s6, 16384, %s317_s19, [#allocation10], %s2329_s24, %s2329_s24, %s2330_s25  }
  0x58   : > { %s335_s11 = sand.u32 1, %s2321_s0   ;;  %s1491_s12 = sshll.u32 %s2325_s28, 7 }
  0x59   : > { %s1490_s30 = sshll.u32 %s335_s11, 7  ;;  %s2530_s14 = scalar_lea.hbm %s2805_s8, %s1491_s12 }
  0x5a   : > { %s337_s21 = scalar_lea.vmem [#allocation11], %s1490_s30  ;;  %s2832_s22 = sand.u32 1, %s2325_s28  }
  0x5b   : > { %s343_s16 = sshll.u32 %s337_s21, 4  ;;  %s2536_s20 = scalar_lea.sflag [#allocation8], %s2832_s22  ;;  %s2532_s16 = int_to_ptr.vmem [resolvable:$true] %s343_s16 }
  0x5c   : > { %s2043_s24 = scalar_lea.hbm %s2530_s14, 2048  ;;  %p2833_p7 = scmp.ne.s32.totalorder %s2829_s23, 0 }
  0x5d   : > { %p2044_p3 = scmp.ne.s32.totalorder %s2530_s14, %s2043_s24  ;;  %s2048_s7 = scalar_lea.hbm %s2805_s8, 4096 }
  0x5e   : > { %p2045_p10 = pneg %p2833_p7  ;;  %p2049_p1 = scmp.lt.u32.totalorder %s2530_s14, %s2805_s8 }
  0x5f   : > { %p2050_p5 = scmp.lt.u32.totalorder %s2048_s7, %s2043_s24  ;;  %p2052_p8 = scmp.lt.u32.totalorder %s2043_s24, %s2530_s14 }
  0x60   : > { %p2046_p13 = pnand %p2045_p10, %p2044_p3 }
  0x61   : > { %p2051_p6 = por %p2050_p5, %p2049_p1 }
  0x62   : > { %p2047_p0 = pneg %p2046_p13 }
  0x63   : > { %p2053_p11 = por %p2052_p8, %p2051_p6 }
  0x65   : > { %p2054_p9 = pnand %p2053_p11, %p2047_p0 }
  0x67   : > { %2057 = shalt.err (!%p2054_p9)
}
  0x68   : > { %s2058_s28 = scalar_lea.vmem %s2532_s16, 2048  ;;  %s2332_s12 = smov [#allocation11]  }
  0x69   : > { %p2059_p12 = scmp.ne.s32.totalorder %s2532_s16, %s2058_s28  ;;  %s2063_s30 = sshll.u32 %s2332_s12, 4  ;;  %s2064_s30 = int_to_ptr.vmem [resolvable:$false] %s2063_s30 }
  0x6a   : > { %s2065_s26 = scalar_lea.vmem %s2064_s30, 4096  ;;  %p2066_p3 = scmp.lt.s32.totalorder %s2532_s16, %s2064_s30 }
  0x6b   : > { %p2061_p2 = pnand %p2059_p12, %p2045_p10  ;;  %p2067_p13 = scmp.lt.s32.totalorder %s2065_s26, %s2058_s28 }
  0x6d   : > { %p2062_p4 = pneg %p2061_p2  ;;  %p2068_p1 = por %p2067_p13, %p2066_p3 }
  0x6f   : > { %p2069_p5 = pnand %p2068_p1, %p2062_p4 }
  0x71   : > { %2072 = shalt.err (!%p2069_p5)
}
  0x72   : > { %s2333_s13 = smov 256   ;;  %s2334_s21 = smov 128  }
  0x73   : > { %s2335_s22 = smov 8   ;;  %p2834_p10 = scmp.ne.s32.totalorder %s2827_s18, 0 }
  0x74   : > { %1886 = dma.hbm_to_vmem [thread:$0]  (!%p2833_p7), %s2530_s14, 2048, %s2532_s16, %s2536_s20, %s2333_s13, %s2334_s21, %s2335_s22  }
  0x75   : > { %361 = sbr.rel (%p2834_p10) target bundleno = 1161 (0x489), region = 52  ;;  %p2835_p0 = scmp.eq.s32.totalorder (!%p2834_p10), %s2434_s29, 0 }
  0x7c   : > { %2284 = dma.done.wait (%p2835_p0), [#allocation8], 16384   ;;  %p2836_p6 = pmov %p2835_p0 }
  0x7d   : > { %p2837_p8 = pmov %p2835_p0 }
  0x7e   : > { %2286 = vsyncadd (%p2836_p6), [#allocation8], 4294950912 }
  0x7f   : > { %2288 = dma.done.wait (%p2837_p8), [#allocation10], 16384   ;;  %p2838_p11 = pmov %p2835_p0 }
  0x80   : > { %s371_s23 = sand.u32 1, %s2434_s29   ;;  %s373_s14 = sand.u32 1, %s2317_s27  }
  0x81   : > { %2290 = vsyncadd (%p2838_p11), [#allocation10], 4294950912  ;;  %s1495_s16 = sshll.u32 %s373_s14, 7  ;;  %s372_s18 = scalar_lea.sflag [#allocation8], %s371_s23 }
  0x82   : > { %s2576_s20 = scalar_lea.vmem [#allocation11], %s1495_s16  ;;  %p2839_p7 = scmp.ne.s32.totalorder %s2826_s17, 0 }
  0x84   : > { %2292 = dma.done.wait (%p2839_p7), %s372_s18, 2048  }
  0x85   : > { %2294 = vsyncadd (%p2839_p7), %s372_s18, 4294965248  ;;  %p414_p9 = scmp.lt.s32.totalorder %s2434_s29, 1  ;;  %p2840_p12 = scmp.ne.s32.totalorder %s2434_s29, 0 }
  0x86   : > { %s425_s17 = sld [smem:[#allocation6]] (!%p2840_p12)  ;;  %s2336_s30 = smov (!%p2840_p12), [#allocation3]  }
  0x87   : > { %s2584_s24 = scalar_select %p414_p9, %s2434_s29, 1 }
  0x88   : > { %424 = sbr.rel (%p2840_p12) target bundleno = 912 (0x390), region = 68  ;;  %s435_s26 = sshll.u32 (!%p2840_p12), %s2336_s30, 4  ;;  %s2600_s26 = int_to_ptr.vmem [resolvable:$true] %s435_s26 }
  0x89   : > { %s1496_s15 = sshll.u32 %s2584_s24, 3  ;;  %s2598_s13 = sld [smem:[#allocation6 + $0x1]] (!%p2840_p12) }
  0x8a   : > { %s2594_s12 = scalar_lea.vmem %s2807_s10, %s1496_s15  ;;  %s2337_s21 = smov (!%p2840_p12), [#allocation3 + $0x1]  }
  0x8b   : > { %s451_s22 = sshll.u32 (!%p2840_p12), %s2337_s21, 4  ;;  %s2602_s23 = sld [smem:[#allocation6 + $0x2]] (!%p2840_p12)  ;;  %s2604_s22 = int_to_ptr.vmem [resolvable:$true] %s451_s22 }
  0x8c   : > { %s2338_s14 = smov (!%p2840_p12), [#allocation3 + $0x2]   ;;  %s2606_s18 = sld [smem:[#allocation6 + $0x3]] (!%p2840_p12) }
  0x8d   : > { %s467_s16 = sshll.u32 (!%p2840_p12), %s2338_s14, 4  ;;  %s1498_s29 = sshll.u32 (!%p2840_p12), %s425_s17, 4  ;;  %s2608_s16 = int_to_ptr.vmem [resolvable:$true] %s467_s16 }
  0x8e   : > { %s427_s15 = scalar_lea.hbm (!%p2840_p12), %s2798_s1, %s1498_s29  ;;  %s2617_s7 = scalar_lea.hbm (!%p2840_p12), %s2798_s1, 3200 }
  0x8f   : > { %s1500_s11 = sshll.u32 %s2598_s13, 4  ;;  %s2073_s28 = scalar_lea.hbm %s427_s15, 16 }
  0x90   : > { %p2074_p2 = scmp.ne.s32.totalorder %s427_s15, %s2073_s28  ;;  %p2076_p4 = scmp.lt.u32.totalorder %s427_s15, %s2798_s1 }
  0x91   : > { %p2077_p3 = scmp.lt.u32.totalorder %s2617_s7, %s2073_s28  ;;  %p2079_p1 = scmp.lt.u32.totalorder %s2073_s28, %s427_s15 }
  0x93   : > { %p2078_p13 = por %p2077_p3, %p2076_p4 }
  0x95   : > { %p2080_p5 = por %p2079_p1, %p2078_p13 }
  0x97   : > { %p2081_p10 = pnand %p2080_p5, %p2074_p2 }
  0x99   : > { %2084 = shalt.err (!%p2081_p10)  }
  0x9a   : > { %s2085_s17 = scalar_lea.vmem %s2600_s26, 16  ;;  %s2626_s13 = scalar_lea.vmem %s2600_s26, 128 }
  0x9b   : > { %p2086_p0 = scmp.ne.s32.totalorder %s2600_s26, %s2085_s17  ;;  %p2090_p6 = scmp.lt.s32.totalorder %s2600_s26, %s2600_s26 }
  0x9c   : > { %p2091_p8 = scmp.lt.s32.totalorder %s2626_s13, %s2085_s17 }
  0x9e   : > { %p2092_p11 = por %p2091_p8, %p2090_p6 }
  0xa0   : > { %p2093_p7 = pnand %p2092_p11, %p2086_p0 }
  0xa2   : > { %2096 = shalt.err (!%p2093_p7)  }
  0xa3   : > { %438 = dma.hbm_to_vmem [thread:$0]  %s427_s15, 16, %s2600_s26, [#allocation4] }
  0xa4   : > { %s441_s14 = scalar_lea.hbm %s2798_s1, %s1500_s11  ;;  %s1502_s29 = sshll.u32 %s2602_s23, 4 }
  0xa5   : > { %s2097_s25 = scalar_lea.hbm %s441_s14, 16  ;;  %p2100_p12 = scmp.lt.u32.totalorder %s441_s14, %s2798_s1 }
  0xa6   : > { %p2098_p9 = scmp.ne.s32.totalorder %s441_s14, %s2097_s25  ;;  %p2101_p2 = scmp.lt.u32.totalorder %s2617_s7, %s2097_s25 }
  0xa7   : > { %p2103_p3 = scmp.lt.u32.totalorder %s2097_s25, %s441_s14 }
  0xa8   : > { %p2102_p4 = por %p2101_p2, %p2100_p12 }
  0xaa   : > { %p2104_p13 = por %p2103_p3, %p2102_p4 }
  0xac   : > { %p2105_p1 = pnand %p2104_p13, %p2098_p9 }
  0xae   : > { %2108 = shalt.err (!%p2105_p1)  }
  0xaf   : > { %s2109_s15 = scalar_lea.vmem %s2604_s22, 16  ;;  %p2114_p10 = scmp.lt.s32.totalorder %s2604_s22, %s2600_s26 }
  0xb0   : > { %p2110_p5 = scmp.ne.s32.totalorder %s2604_s22, %s2109_s15  ;;  %p2115_p0 = scmp.lt.s32.totalorder %s2626_s13, %s2109_s15 }
  0xb2   : > { %p2116_p6 = por %p2115_p0, %p2114_p10 }
  0xb4   : > { %p2117_p8 = pnand %p2116_p6, %p2110_p5 }
  0xb6   : > { %2120 = shalt.err (!%p2117_p8)  }
  0xb7   : > { %454 = dma.hbm_to_vmem [thread:$0]  %s441_s14, 16, %s2604_s22, [#allocation4 + $0x1] }
  0xb8   : > { %s457_s30 = scalar_lea.hbm %s2798_s1, %s1502_s29  ;;  %s1504_s21 = sshll.u32 %s2606_s18, 4 }
  0xb9   : > { %s2121_s17 = scalar_lea.hbm %s457_s30, 16  ;;  %p2124_p7 = scmp.lt.u32.totalorder %s457_s30, %s2798_s1 }
  0xba   : > { %p2122_p11 = scmp.ne.s32.totalorder %s457_s30, %s2121_s17  ;;  %p2125_p9 = scmp.lt.u32.totalorder %s2617_s7, %s2121_s17 }
  0xbb   : > { %p2127_p2 = scmp.lt.u32.totalorder %s2121_s17, %s457_s30 }
  0xbc   : > { %p2126_p12 = por %p2125_p9, %p2124_p7 }
  0xbe   : > { %p2128_p4 = por %p2127_p2, %p2126_p12 }
  0xc0   : > { %p2129_p3 = pnand %p2128_p4, %p2122_p11 }
  0xc2   : > { %2132 = shalt.err (!%p2129_p3)  }
  0xc3   : > { %s2133_s22 = scalar_lea.vmem %s2608_s16, 16  ;;  %p2138_p1 = scmp.lt.s32.totalorder %s2608_s16, %s2600_s26 }
  0xc4   : > { %p2134_p13 = scmp.ne.s32.totalorder %s2608_s16, %s2133_s22  ;;  %p2139_p5 = scmp.lt.s32.totalorder %s2626_s13, %s2133_s22 }
  0xc6   : > { %p2140_p10 = por %p2139_p5, %p2138_p1 }
  0xc8   : > { %p2141_p0 = pnand %p2140_p10, %p2134_p13 }
  0xca   : > { %2144 = shalt.err (!%p2141_p0)  }
  0xcb   : > { %470 = dma.hbm_to_vmem [thread:$0]  %s457_s30, 16, %s2608_s16, [#allocation4 + $0x2] }
  0xcc   : > { %s473_s29 = scalar_lea.hbm %s2798_s1, %s1504_s21  ;;  %s2339_s25 = smov [#allocation3 + $0x3]  }
  0xcd   : > { %s483_s19 = sshll.u32 %s2339_s25, 4  ;;  %s2663_s28 = sld [smem:[#allocation6 + $0x4]]  ;;  %s484_s19 = int_to_ptr.vmem [resolvable:$true] %s483_s19 }
  0xce   : > { %s2145_s15 = scalar_lea.hbm %s473_s29, 16  ;;  %p2148_p8 = scmp.lt.u32.totalorder %s473_s29, %s2798_s1 }
  0xcf   : > { %p2146_p6 = scmp.ne.s32.totalorder %s473_s29, %s2145_s15  ;;  %p2149_p11 = scmp.lt.u32.totalorder %s2617_s7, %s2145_s15 }
  0xd0   : > { %p2151_p9 = scmp.lt.u32.totalorder %s2145_s15, %s473_s29 }
  0xd1   : > { %p2150_p7 = por %p2149_p11, %p2148_p8 }
  0xd3   : > { %p2152_p12 = por %p2151_p9, %p2150_p7 }
  0xd5   : > { %p2153_p2 = pnand %p2152_p12, %p2146_p6 }
  0xd7   : > { %2156 = shalt.err (!%p2153_p2)  }
  0xd8   : > { %s2157_s16 = scalar_lea.vmem %s484_s19, 16  ;;  %p2162_p3 = scmp.lt.s32.totalorder %s484_s19, %s2600_s26 }
  0xd9   : > { %p2158_p4 = scmp.ne.s32.totalorder %s484_s19, %s2157_s16  ;;  %p2163_p13 = scmp.lt.s32.totalorder %s2626_s13, %s2157_s16 }
  0xdb   : > { %p2164_p1 = por %p2163_p13, %p2162_p3 }
  0xdd   : > { %p2165_p5 = pnand %p2164_p1, %p2158_p4 }
  0xdf   : > { %2168 = shalt.err (!%p2165_p5)  }
  0xe0   : > { %486 = dma.hbm_to_vmem [thread:$0]  %s473_s29, 16, %s484_s19, [#allocation4 + $0x3] }
  0xe1   : > { %s2340_s30 = smov [#allocation3 + $0x4]   ;;  %s2671_s17 = sld [smem:[#allocation6 + $0x5]] }
  0xe2   : > { %s499_s21 = sshll.u32 %s2340_s30, 4  ;;  %s2341_s4 = smov [#allocation3 + $0x5]   ;;  %s500_s21 = int_to_ptr.vmem [resolvable:$true] %s499_s21 }
  0xe3   : > { %s515_s6 = sshll.u32 %s2341_s4, 4  ;;  %s2673_s22 = sld [smem:[#allocation6 + $0x6]]  ;;  %s2676_s6 = int_to_ptr.vmem [resolvable:$true] %s515_s6 }
  0xe4   : > { %s1506_s18 = sshll.u32 %s2663_s28, 4 }
  0xe5   : > { %s489_s15 = scalar_lea.hbm %s2798_s1, %s1506_s18 }
  0xe6   : > { %s2169_s23 = scalar_lea.hbm %s489_s15, 16  ;;  %p2172_p0 = scmp.lt.u32.totalorder %s489_s15, %s2798_s1 }
  0xe7   : > { %p2170_p10 = scmp.ne.s32.totalorder %s489_s15, %s2169_s23  ;;  %p2173_p6 = scmp.lt.u32.totalorder %s2617_s7, %s2169_s23 }
  0xe8   : > { %p2175_p11 = scmp.lt.u32.totalorder %s2169_s23, %s489_s15 }
  0xe9   : > { %p2174_p8 = por %p2173_p6, %p2172_p0 }
  0xeb   : > { %p2176_p7 = por %p2175_p11, %p2174_p8 }
  0xed   : > { %p2177_p9 = pnand %p2176_p7, %p2170_p10 }
  0xef   : > { %2180 = shalt.err (!%p2177_p9)  }
  0xf0   : > { %s2181_s11 = scalar_lea.vmem %s500_s21, 16  ;;  %p2186_p2 = scmp.lt.s32.totalorder %s500_s21, %s2600_s26 }
  0xf1   : > { %p2182_p12 = scmp.ne.s32.totalorder %s500_s21, %s2181_s11  ;;  %p2187_p4 = scmp.lt.s32.totalorder %s2626_s13, %s2181_s11 }
  0xf3   : > { %p2188_p3 = por %p2187_p4, %p2186_p2 }
  0xf5   : > { %p2189_p13 = pnand %p2188_p3, %p2182_p12 }
  0xf7   : > { %2192 = shalt.err (!%p2189_p13)  }
  0xf8   : > { %502 = dma.hbm_to_vmem [thread:$0]  %s489_s15, 16, %s500_s21, [#allocation4 + $0x4] }
  0xf9   : > { %s1508_s28 = sshll.u32 %s2671_s17, 4  ;;  %s2342_s16 = smov [#allocation3 + $0x6]  }
  0xfa   : > { %s531_s30 = sshll.u32 %s2342_s16, 4  ;;  %s505_s14 = scalar_lea.hbm %s2798_s1, %s1508_s28  ;;  %s2691_s30 = int_to_ptr.vmem [resolvable:$true] %s531_s30 }
  0xfb   : > { %s2193_s25 = scalar_lea.hbm %s505_s14, 16  ;;  %p2196_p5 = scmp.lt.u32.totalorder %s505_s14, %s2798_s1 }
  0xfc   : > { %p2194_p1 = scmp.ne.s32.totalorder %s505_s14, %s2193_s25  ;;  %p2197_p10 = scmp.lt.u32.totalorder %s2617_s7, %s2193_s25 }
  0xfd   : > { %p2199_p6 = scmp.lt.u32.totalorder %s2193_s25, %s505_s14 }
  0xfe   : > { %p2198_p0 = por %p2197_p10, %p2196_p5 }
 0x100   : > { %p2200_p8 = por %p2199_p6, %p2198_p0 }
 0x102   : > { %p2201_p11 = pnand %p2200_p8, %p2194_p1 }
 0x104   : > { %2204 = shalt.err (!%p2201_p11)  }
 0x105   : > { %s2205_s21 = scalar_lea.vmem %s2676_s6, 16  ;;  %p2210_p9 = scmp.lt.s32.totalorder %s2676_s6, %s2600_s26 }
 0x106   : > { %p2206_p7 = scmp.ne.s32.totalorder %s2676_s6, %s2205_s21  ;;  %p2211_p12 = scmp.lt.s32.totalorder %s2626_s13, %s2205_s21 }
 0x108   : > { %p2212_p2 = por %p2211_p12, %p2210_p9 }
 0x10a   : > { %p2213_p4 = pnand %p2212_p2, %p2206_p7 }
 0x10c   : > { %2216 = shalt.err (!%p2213_p4)  }
 0x10d   : > { %518 = dma.hbm_to_vmem [thread:$0]  %s505_s14, 16, %s2676_s6, [#allocation4 + $0x5] }
 0x10e   : > { %s1510_s17 = sshll.u32 %s2673_s22, 4  ;;  %s1511_s15 = sld [smem:[#allocation6 + $0x7]] }
 0x10f   : > { %s521_s28 = scalar_lea.hbm %s2798_s1, %s1510_s17 }
 0x110   : > { %s2217_s16 = scalar_lea.hbm %s521_s28, 16  ;;  %p2220_p13 = scmp.lt.u32.totalorder %s521_s28, %s2798_s1 }
 0x111   : > { %p2218_p3 = scmp.ne.s32.totalorder %s521_s28, %s2217_s16  ;;  %p2221_p1 = scmp.lt.u32.totalorder %s2617_s7, %s2217_s16 }
 0x112   : > { %p2223_p10 = scmp.lt.u32.totalorder %s2217_s16, %s521_s28 }
 0x113   : > { %p2222_p5 = por %p2221_p1, %p2220_p13 }
 0x115   : > { %p2224_p0 = por %p2223_p10, %p2222_p5 }
 0x117   : > { %p2225_p6 = pnand %p2224_p0, %p2218_p3 }
 0x119   : > { %2228 = shalt.err (!%p2225_p6)  }
 0x11a   : > { %s2229_s6 = scalar_lea.vmem %s2691_s30, 16  ;;  %p2234_p11 = scmp.lt.s32.totalorder %s2691_s30, %s2600_s26 }
 0x11b   : > { %p2230_p8 = scmp.ne.s32.totalorder %s2691_s30, %s2229_s6  ;;  %p2235_p7 = scmp.lt.s32.totalorder %s2626_s13, %s2229_s6 }
 0x11d   : > { %p2236_p9 = por %p2235_p7, %p2234_p11 }
 0x11f   : > { %p2237_p12 = pnand %p2236_p9, %p2230_p8 }
 0x121   : > { %2240 = shalt.err (!%p2237_p12)  }
 0x122   : > { %534 = dma.hbm_to_vmem [thread:$0]  %s521_s28, 16, %s2691_s30, [#allocation4 + $0x6] }
 0x123   : > { %s2343_s22 = smov [#allocation3 + $0x7]   ;;  %s1512_s25 = sshll.u32 %s1511_s15, 4 }
 0x124   : > { %s547_s14 = sshll.u32 %s2343_s22, 4  ;;  %s537_s21 = scalar_lea.hbm %s2798_s1, %s1512_s25  ;;  %s548_s14 = int_to_ptr.vmem [resolvable:$true] %s547_s14 }
 0x125   : > { %s2241_s17 = scalar_lea.hbm %s537_s21, 16  ;;  %p2244_p4 = scmp.lt.u32.totalorder %s537_s21, %s2798_s1 }
 0x126   : > { %p2242_p2 = scmp.ne.s32.totalorder %s537_s21, %s2241_s17  ;;  %p2245_p3 = scmp.lt.u32.totalorder %s2617_s7, %s2241_s17 }
 0x127   : > { %p2247_p1 = scmp.lt.u32.totalorder %s2241_s17, %s537_s21 }
 0x128   : > { %p2246_p13 = por %p2245_p3, %p2244_p4 }
 0x12a   : > { %p2248_p5 = por %p2247_p1, %p2246_p13 }
 0x12c   : > { %p2249_p10 = pnand %p2248_p5, %p2242_p2 }
 0x12e   : > { %2252 = shalt.err (!%p2249_p10)  }
 0x12f   : > { %s2253_s30 = scalar_lea.vmem %s548_s14, 16  ;;  %p2258_p6 = scmp.lt.s32.totalorder %s548_s14, %s2600_s26 }
 0x130   : > { %p2254_p0 = scmp.ne.s32.totalorder %s548_s14, %s2253_s30  ;;  %p2259_p8 = scmp.lt.s32.totalorder %s2626_s13, %s2253_s30 }
 0x132   : > { %p2260_p11 = por %p2259_p8, %p2258_p6 }
 0x134   : > { %p2261_p7 = pnand %p2260_p11, %p2254_p0 }
 0x136   : > { %2264 = shalt.err (!%p2261_p7)  }
 0x137   : > { %550 = dma.hbm_to_vmem [thread:$0]  %s537_s21, 16, %s548_s14, [#allocation4 + $0x7] }
 0x138   : > { %2295 = dma.done.wait [#allocation4], 16 }
 0x139   : > { %2296 = vsyncadd [#allocation4], 4294967280 }
 0x13a   : > { %2297 = dma.done.wait [#allocation4 + $0x1], 16 }
 0x13b   : > { %2298 = vsyncadd [#allocation4 + $0x1], 4294967280 }
 0x13c   : > { %2299 = dma.done.wait [#allocation4 + $0x2], 16 }
 0x13d   : > { %2300 = vsyncadd [#allocation4 + $0x2], 4294967280 }
 0x13e   : > { %2301 = dma.done.wait [#allocation4 + $0x3], 16 }
 0x13f   : > { %2302 = vsyncadd [#allocation4 + $0x3], 4294967280 }
 0x140   : > { %2303 = dma.done.wait [#allocation4 + $0x4], 16 }
 0x141   : > { %2304 = vsyncadd [#allocation4 + $0x4], 4294967280 }
 0x142   : > { %2305 = dma.done.wait [#allocation4 + $0x5], 16 }
 0x143   : > { %2306 = vsyncadd [#allocation4 + $0x5], 4294967280 }
 0x144   : > { %2307 = dma.done.wait [#allocation4 + $0x6], 16 }
 0x145   : > { %2308 = vsyncadd [#allocation4 + $0x6], 4294967280 }
 0x146   : > { %2309 = dma.done.wait [#allocation4 + $0x7], 16 }
 0x147   : > { %2310 = vsyncadd [#allocation4 + $0x7], 4294967280  ;;  %v572_v0 = vld [vmem:[#allocation7 + $0x8] sm:$0xff]  ;;  %v571_v2 = vld [vmem:[#allocation7] sm:$0xff]  ;;  %s2841_s14 = sld [smem:[#allocation48_spill]]  ;;  %s2842_s29 = sld [smem:[#allocation47_spill]] }
 0x148   : > { %v576_v1 = vld [vmem:[#allocation7 + $0x28] sm:$0xff]  ;;  %v575_v4 = vld [vmem:[#allocation7 + $0x20] sm:$0xff]  ;;  %v574_v18 = vld [vmem:[#allocation7 + $0x18] sm:$0xff]  ;;  %s2843_s19 = sld [smem:[#allocation46_spill]] }
 0x149   : > { %v1586_v3 = vpack.c.bf16 %v576_v1, %v572_v0  ;;  %v580_v5 = vld [vmem:[#allocation7 + $0x48] sm:$0xff]  ;;  %v1588_v7 = vpack.c.bf16 %v575_v4, %v571_v2  ;;  %v579_v9 = vld [vmem:[#allocation7 + $0x40] sm:$0xff]  ;;  %v578_v19 = vld [vmem:[#allocation7 + $0x38] sm:$0xff] }
 0x14a   : > { %v584_v6 = vld [vmem:[#allocation7 + $0x68] sm:$0xff]  ;;  %v583_v10 = vld [vmem:[#allocation7 + $0x60] sm:$0xff]  ;;  %v1650_v21 = vpack.c.bf16 %v578_v19, %v574_v18  ;;  %v573_v22 = vld [vmem:[#allocation7 + $0x10] sm:$0xff] }
 0x14b   : > { %v1590_v8 = vpack.c.bf16 %v584_v6, %v580_v5  ;;  %v588_v11 = vld [vmem:[#allocation7 + $0x88] sm:$0xff]  ;;  %1587 = vmatprep.subr.bf16.mxu0 %v1586_v3  ;;  %v1592_v13 = vpack.c.bf16 %v583_v10, %v579_v9  ;;  %v587_v14 = vld [vmem:[#allocation7 + $0x80] sm:$0xff]  ;;  %v577_v23 = vld [vmem:[#allocation7 + $0x30] sm:$0xff] }
 0x14c   : > { %v592_v12 = vld [vmem:[#allocation7 + $0xa8] sm:$0xff]  ;;  %1589 = vmatpush1.bf16.msra.mxu0 %v1588_v7  ;;  %v591_v15 = vld [vmem:[#allocation7 + $0xa0] sm:$0xff]  ;;  %v1652_v24 = vpack.c.bf16 %v577_v23, %v573_v22  ;;  %1651 = vmatprep.subr.bf16.mxu1 %v1650_v21  ;;  %v582_v26 = vld [vmem:[#allocation7 + $0x58] sm:$0xff] }
 0x14d   : > { %1591 = vmatprep.subr.bf16.mxu0 %v1590_v8  ;;  %v1594_v16 = vpack.c.bf16 %v592_v12, %v588_v11  ;;  %v596_v17 = vld [vmem:[#allocation7 + $0xc8] sm:$0xff]  ;;  %v1596_v25 = vpack.c.bf16 %v591_v15, %v587_v14  ;;  %v586_v27 = vld [vmem:[#allocation7 + $0x78] sm:$0xff]  ;;  %v581_v28 = vld [vmem:[#allocation7 + $0x50] sm:$0xff] }
 0x14e   : > { %v600_v20 = vld [vmem:[#allocation7 + $0xe8] sm:$0xff]  ;;  %v595_v30 = vld [vmem:[#allocation7 + $0xc0] sm:$0xff]  ;;  %1653 = vmatpush1.bf16.msra.mxu1 %v1652_v24  ;;  %v1654_v32 = vpack.c.bf16 %v586_v27, %v582_v26  ;;  %v585_v33 = vld [vmem:[#allocation7 + $0x70] sm:$0xff] }
 0x14f   : > { %v1598_v29 = vpack.c.bf16 %v600_v20, %v596_v17  ;;  %v599_v31 = vld [vmem:[#allocation7 + $0xe0] sm:$0xff]  ;;  %v604_v34 = vld [vmem:[#allocation7 + $0x108] sm:$0xff]  ;;  %v1656_v36 = vpack.c.bf16 %v585_v33, %v581_v28  ;;  %v590_v37 = vld [vmem:[#allocation7 + $0x98] sm:$0xff] }
 0x150   : > { %1593 = vmatpush1.bf16.msra.mxu0 %v1592_v13  ;;  %v608_v35 = vld [vmem:[#allocation7 + $0x128] sm:$0xff]  ;;  %1655 = vmatprep.subr.bf16.mxu1 %v1654_v32  ;;  %v594_v38 = vld [vmem:[#allocation7 + $0xb8] sm:$0xff]  ;;  %v589_v39 = vld [vmem:[#allocation7 + $0x90] sm:$0xff]  ;;  %v1600_v41 = vpack.c.bf16 %v599_v31, %v595_v30 }
 0x151   : > { %1595 = vmatprep.subr.bf16.mxu0 %v1594_v16  ;;  %v593_v40 = vld [vmem:[#allocation7 + $0xb0] sm:$0xff]  ;;  %v603_v42 = vld [vmem:[#allocation7 + $0x100] sm:$0xff]  ;;  %v1658_v44 = vpack.c.bf16 %v594_v38, %v590_v37  ;;  %v1602_v45 = vpack.c.bf16 %v608_v35, %v604_v34  ;;  %v612_v46 = vld [vmem:[#allocation7 + $0x148] sm:$0xff] }
 0x152   : > { %v607_v43 = vld [vmem:[#allocation7 + $0x120] sm:$0xff]  ;;  %1657 = vmatpush1.bf16.msra.mxu1 %v1656_v36  ;;  %v1660_v47 = vpack.c.bf16 %v593_v40, %v589_v39  ;;  %v598_v48 = vld [vmem:[#allocation7 + $0xd8] sm:$0xff]  ;;  %v616_v50 = vld [vmem:[#allocation7 + $0x168] sm:$0xff] }
 0x153   : > { %v602_v49 = vld [vmem:[#allocation7 + $0xf8] sm:$0xff]  ;;  %1659 = vmatprep.subr.bf16.mxu1 %v1658_v44  ;;  %v597_v52 = vld [vmem:[#allocation7 + $0xd0] sm:$0xff]  ;;  %v1604_v54 = vpack.c.bf16 %v607_v43, %v603_v42  ;;  %v1606_v57 = vpack.c.bf16 %v616_v50, %v612_v46  ;;  %v611_v58 = vld [vmem:[#allocation7 + $0x140] sm:$0xff] }
 0x154   : > { %1597 = vmatpush1.bf16.msra.mxu0 %v1596_v25  ;;  %v1662_v51 = vpack.c.bf16 %v602_v49, %v598_v48  ;;  %v601_v53 = vld [vmem:[#allocation7 + $0xf0] sm:$0xff]  ;;  %v606_v55 = vld [vmem:[#allocation7 + $0x118] sm:$0xff]  ;;  %v615_v59 = vld [vmem:[#allocation7 + $0x160] sm:$0xff] }
 0x155   : > { %1599 = vmatprep.subr.bf16.mxu0 %v1598_v29  ;;  %v610_v56 = vld [vmem:[#allocation7 + $0x138] sm:$0xff]  ;;  %v620_v60 = vld [vmem:[#allocation7 + $0x188] sm:$0xff]  ;;  %v1664_v61 = vpack.c.bf16 %v601_v53, %v597_v52  ;;  %v605_v0 = vld [vmem:[#allocation7 + $0x110] sm:$0xff]  ;;  %v1608_v4 = vpack.c.bf16 %v615_v59, %v611_v58 }
 0x156   : > { %1661 = vmatpush1.bf16.msra.mxu1 %v1660_v47  ;;  %v624_v62 = vld [vmem:[#allocation7 + $0x1a8] sm:$0xff]  ;;  %v1666_v63 = vpack.c.bf16 %v610_v56, %v606_v55  ;;  %v609_v1 = vld [vmem:[#allocation7 + $0x130] sm:$0xff]  ;;  %v614_v2 = vld [vmem:[#allocation7 + $0x158] sm:$0xff] }
 0x157   : > { %1663 = vmatprep.subr.bf16.mxu1 %v1662_v51  ;;  %v618_v3 = vld [vmem:[#allocation7 + $0x178] sm:$0xff]  ;;  %v1610_v5 = vpack.c.bf16 %v624_v62, %v620_v60  ;;  %v619_v6 = vld [vmem:[#allocation7 + $0x180] sm:$0xff]  ;;  %v628_v8 = vld [vmem:[#allocation7 + $0x1c8] sm:$0xff]  ;;  %v1668_v9 = vpack.c.bf16 %v609_v1, %v605_v0 }
 0x158   : > { %1601 = vmatpush1.bf16.msra.mxu0 %v1600_v41  ;;  %v623_v7 = vld [vmem:[#allocation7 + $0x1a0] sm:$0xff]  ;;  %v632_v10 = vld [vmem:[#allocation7 + $0x1e8] sm:$0xff]  ;;  %v1670_v11 = vpack.c.bf16 %v618_v3, %v614_v2  ;;  %v613_v12 = vld [vmem:[#allocation7 + $0x150] sm:$0xff] }
 0x159   : > { %1603 = vmatprep.subr.bf16.mxu0 %v1602_v45  ;;  %v617_v13 = vld [vmem:[#allocation7 + $0x170] sm:$0xff]  ;;  %v622_v14 = vld [vmem:[#allocation7 + $0x198] sm:$0xff]  ;;  %v1612_v16 = vpack.c.bf16 %v623_v7, %v619_v6  ;;  %v1614_v17 = vpack.c.bf16 %v632_v10, %v628_v8  ;;  %v627_v18 = vld [vmem:[#allocation7 + $0x1c0] sm:$0xff] }
 0x15a   : > { %1665 = vmatpush1.bf16.msra.mxu1 %v1664_v61  ;;  %v626_v15 = vld [vmem:[#allocation7 + $0x1b8] sm:$0xff]  ;;  %v631_v19 = vld [vmem:[#allocation7 + $0x1e0] sm:$0xff]  ;;  %v636_v20 = vld [vmem:[#allocation7 + $0x208] sm:$0xff]  ;;  %v1672_v21 = vpack.c.bf16 %v617_v13, %v613_v12 }
 0x15b   : > { %1667 = vmatprep.subr.bf16.mxu1 %v1666_v63  ;;  %v640_v22 = vld [vmem:[#allocation7 + $0x228] sm:$0xff]  ;;  %v1674_v23 = vpack.c.bf16 %v626_v15, %v622_v14  ;;  %v621_v24 = vld [vmem:[#allocation7 + $0x190] sm:$0xff]  ;;  %v630_v26 = vld [vmem:[#allocation7 + $0x1d8] sm:$0xff]  ;;  %v1616_v28 = vpack.c.bf16 %v631_v19, %v627_v18 }
 0x15c   : > { %1605 = vmatpush1.bf16.msra.mxu0 %v1604_v54  ;;  %v625_v25 = vld [vmem:[#allocation7 + $0x1b0] sm:$0xff]  ;;  %v634_v27 = vld [vmem:[#allocation7 + $0x1f8] sm:$0xff]  ;;  %v1618_v29 = vpack.c.bf16 %v640_v22, %v636_v20  ;;  %v635_v30 = vld [vmem:[#allocation7 + $0x200] sm:$0xff] }
 0x15d   : > { %1607 = vmatprep.subr.bf16.mxu0 %v1606_v57  ;;  %v639_v31 = vld [vmem:[#allocation7 + $0x220] sm:$0xff]  ;;  %v644_v32 = vld [vmem:[#allocation7 + $0x248] sm:$0xff]  ;;  %v1676_v33 = vpack.c.bf16 %v625_v25, %v621_v24  ;;  %v1678_v35 = vpack.c.bf16 %v634_v27, %v630_v26  ;;  %v629_v36 = vld [vmem:[#allocation7 + $0x1d0] sm:$0xff] }
 0x15e   : > { %1669 = vmatpush1.bf16.msra.mxu1 %v1668_v9  ;;  %v648_v34 = vld [vmem:[#allocation7 + $0x268] sm:$0xff]  ;;  %v633_v37 = vld [vmem:[#allocation7 + $0x1f0] sm:$0xff]  ;;  %v638_v38 = vld [vmem:[#allocation7 + $0x218] sm:$0xff]  ;;  %v1620_v40 = vpack.c.bf16 %v639_v31, %v635_v30 }
 0x15f   : > { %1671 = vmatprep.subr.bf16.mxu1 %v1670_v11  ;;  %v642_v39 = vld [vmem:[#allocation7 + $0x238] sm:$0xff]  ;;  %v1622_v41 = vpack.c.bf16 %v648_v34, %v644_v32  ;;  %v643_v42 = vld [vmem:[#allocation7 + $0x240] sm:$0xff]  ;;  %v652_v44 = vld [vmem:[#allocation7 + $0x288] sm:$0xff]  ;;  %v1680_v45 = vpack.c.bf16 %v633_v37, %v629_v36 }
 0x160   : > { %1609 = vmatpush1.bf16.msra.mxu0 %v1608_v4  ;;  %v647_v43 = vld [vmem:[#allocation7 + $0x260] sm:$0xff]  ;;  %v656_v46 = vld [vmem:[#allocation7 + $0x2a8] sm:$0xff]  ;;  %v1682_v47 = vpack.c.bf16 %v642_v39, %v638_v38  ;;  %v637_v48 = vld [vmem:[#allocation7 + $0x210] sm:$0xff] }
 0x161   : > { %1611 = vmatprep.subr.bf16.mxu0 %v1610_v5  ;;  %v641_v49 = vld [vmem:[#allocation7 + $0x230] sm:$0xff]  ;;  %v646_v50 = vld [vmem:[#allocation7 + $0x258] sm:$0xff]  ;;  %v1624_v52 = vpack.c.bf16 %v647_v43, %v643_v42  ;;  %v651_v53 = vld [vmem:[#allocation7 + $0x280] sm:$0xff]  ;;  %v1626_v54 = vpack.c.bf16 %v656_v46, %v652_v44 }
 0x162   : > { %1673 = vmatpush1.bf16.msra.mxu1 %v1672_v21  ;;  %v650_v51 = vld [vmem:[#allocation7 + $0x278] sm:$0xff]  ;;  %v655_v55 = vld [vmem:[#allocation7 + $0x2a0] sm:$0xff]  ;;  %v660_v56 = vld [vmem:[#allocation7 + $0x2c8] sm:$0xff]  ;;  %v1684_v58 = vpack.c.bf16 %v641_v49, %v637_v48 }
 0x163   : > { %1675 = vmatprep.subr.bf16.mxu1 %v1674_v23  ;;  %v664_v57 = vld [vmem:[#allocation7 + $0x2e8] sm:$0xff]  ;;  %v1686_v59 = vpack.c.bf16 %v650_v51, %v646_v50  ;;  %v645_v60 = vld [vmem:[#allocation7 + $0x250] sm:$0xff]  ;;  %v654_v63 = vld [vmem:[#allocation7 + $0x298] sm:$0xff]  ;;  %v1628_v1 = vpack.c.bf16 %v655_v55, %v651_v53 }
 0x164   : > { %1613 = vmatpush1.bf16.msra.mxu0 %v1612_v16  ;;  %v649_v61 = vld [vmem:[#allocation7 + $0x270] sm:$0xff]  ;;  %v658_v0 = vld [vmem:[#allocation7 + $0x2b8] sm:$0xff]  ;;  %v1630_v2 = vpack.c.bf16 %v664_v57, %v660_v56  ;;  %v659_v3 = vld [vmem:[#allocation7 + $0x2c0] sm:$0xff] }
 0x165   : > { %1615 = vmatprep.subr.bf16.mxu0 %v1614_v17  ;;  %v569_v62 = vld [vmem:[%s2799_s2] sm:$0xff]  ;;  %v663_v4 = vld [vmem:[#allocation7 + $0x2e0] sm:$0xff]  ;;  %v668_v5 = vld [vmem:[#allocation7 + $0x308] sm:$0xff]  ;;  %v1688_v6 = vpack.c.bf16 %v649_v61, %v645_v60  ;;  %v1690_v8 = vpack.c.bf16 %v658_v0, %v654_v63 }
 0x166   : > { %1677 = vmatpush1.bf16.msra.mxu1 %v1676_v33  ;;  %785 = vmatprep.mubr.f32.mxu0 %v569_v62  ;;  %v672_v7 = vld [vmem:[#allocation7 + $0x328] sm:$0xff]  ;;  %v653_v9 = vld [vmem:[#allocation7 + $0x290] sm:$0xff]  ;;  %v662_v11 = vld [vmem:[#allocation7 + $0x2d8] sm:$0xff]  ;;  %v1632_v13 = vpack.c.bf16 %v663_v4, %v659_v3 }
 0x167   : > { %1679 = vmatprep.subr.bf16.mxu1 %v1678_v35  ;;  %856 = vmatprep.mubr.f32.mxu1 %v569_v62  ;;  %v657_v10 = vld [vmem:[#allocation7 + $0x2b0] sm:$0xff]  ;;  %v666_v12 = vld [vmem:[#allocation7 + $0x2f8] sm:$0xff]  ;;  %v1634_v14 = vpack.c.bf16 %v672_v7, %v668_v5  ;;  %v667_v15 = vld [vmem:[#allocation7 + $0x300] sm:$0xff] }
 0x168   : > { %1617 = vmatpush1.bf16.msra.mxu0 %v1616_v28  ;;  %v671_v16 = vld [vmem:[#allocation7 + $0x320] sm:$0xff]  ;;  %v676_v17 = vld [vmem:[#allocation7 + $0x348] sm:$0xff]  ;;  %v1692_v18 = vpack.c.bf16 %v657_v10, %v653_v9  ;;  %v1694_v20 = vpack.c.bf16 %v666_v12, %v662_v11  ;;  %v661_v21 = vld [vmem:[#allocation7 + $0x2d0] sm:$0xff] }
 0x169   : > { %1619 = vmatprep.subr.bf16.mxu0 %v1618_v29  ;;  %v680_v19 = vld [vmem:[#allocation7 + $0x368] sm:$0xff]  ;;  %v665_v22 = vld [vmem:[#allocation7 + $0x2f0] sm:$0xff]  ;;  %v670_v23 = vld [vmem:[#allocation7 + $0x318] sm:$0xff]  ;;  %v1636_v25 = vpack.c.bf16 %v671_v16, %v667_v15 }
 0x16a   : > { %1681 = vmatpush1.bf16.msra.mxu1 %v1680_v45  ;;  %v674_v24 = vld [vmem:[#allocation7 + $0x338] sm:$0xff]  ;;  %v1638_v26 = vpack.c.bf16 %v680_v19, %v676_v17  ;;  %v675_v27 = vld [vmem:[#allocation7 + $0x340] sm:$0xff]  ;;  %v684_v29 = vld [vmem:[#allocation7 + $0x388] sm:$0xff]  ;;  %v1696_v30 = vpack.c.bf16 %v665_v22, %v661_v21 }
 0x16b   : > { %1683 = vmatprep.subr.bf16.mxu1 %v1682_v47  ;;  %v679_v28 = vld [vmem:[#allocation7 + $0x360] sm:$0xff]  ;;  %v688_v31 = vld [vmem:[#allocation7 + $0x3a8] sm:$0xff]  ;;  %v1698_v32 = vpack.c.bf16 %v674_v24, %v670_v23  ;;  %v669_v33 = vld [vmem:[#allocation7 + $0x310] sm:$0xff] }
 0x16c   : > { %1621 = vmatpush1.bf16.msra.mxu0 %v1620_v40  ;;  %v673_v34 = vld [vmem:[#allocation7 + $0x330] sm:$0xff]  ;;  %v678_v35 = vld [vmem:[#allocation7 + $0x358] sm:$0xff]  ;;  %v1640_v37 = vpack.c.bf16 %v679_v28, %v675_v27  ;;  %v1642_v38 = vpack.c.bf16 %v688_v31, %v684_v29  ;;  %v683_v39 = vld [vmem:[#allocation7 + $0x380] sm:$0xff] }
 0x16d   : > { %1623 = vmatprep.subr.bf16.mxu0 %v1622_v41  ;;  %v682_v36 = vld [vmem:[#allocation7 + $0x378] sm:$0xff]  ;;  %v687_v40 = vld [vmem:[#allocation7 + $0x3a0] sm:$0xff]  ;;  %v692_v41 = vld [vmem:[#allocation7 + $0x3c8] sm:$0xff]  ;;  %v1700_v42 = vpack.c.bf16 %v673_v34, %v669_v33 }
 0x16e   : > { %1685 = vmatpush1.bf16.msra.mxu1 %v1684_v58  ;;  %v696_v43 = vld [vmem:[#allocation7 + $0x3e8] sm:$0xff]  ;;  %v1702_v44 = vpack.c.bf16 %v682_v36, %v678_v35  ;;  %v677_v45 = vld [vmem:[#allocation7 + $0x350] sm:$0xff]  ;;  %v686_v47 = vld [vmem:[#allocation7 + $0x398] sm:$0xff]  ;;  %v1644_v49 = vpack.c.bf16 %v687_v40, %v683_v39 }
 0x16f   : > { %1687 = vmatprep.subr.bf16.mxu1 %v1686_v59  ;;  %v681_v46 = vld [vmem:[#allocation7 + $0x370] sm:$0xff]  ;;  %v690_v48 = vld [vmem:[#allocation7 + $0x3b8] sm:$0xff]  ;;  %v1646_v50 = vpack.c.bf16 %v696_v43, %v692_v41  ;;  %v691_v51 = vld [vmem:[#allocation7 + $0x3c0] sm:$0xff] }
 0x170   : > { %1625 = vmatpush1.bf16.msra.mxu0 %v1624_v52  ;;  %v695_v52 = vld [vmem:[#allocation7 + $0x3e0] sm:$0xff]  ;;  %v1704_v53 = vpack.c.bf16 %v681_v46, %v677_v45  ;;  %v1706_v55 = vpack.c.bf16 %v690_v48, %v686_v47  ;;  %v689_v56 = vld [vmem:[#allocation7 + $0x3b0] sm:$0xff]  ;;  %v894_v57 = vld [vmem:[#allocation9 + $0x8] sm:$0xff] }
 0x171   : > { %1627 = vmatprep.subr.bf16.mxu0 %v1626_v54  ;;  %v685_v54 = vld [vmem:[#allocation7 + $0x390] sm:$0xff]  ;;  %v898_v58 = vld [vmem:[#allocation9 + $0x28] sm:$0xff]  ;;  %v694_v59 = vld [vmem:[#allocation7 + $0x3d8] sm:$0xff]  ;;  %v1648_v61 = vpack.c.bf16 %v695_v52, %v691_v51 }
 0x172   : > { %1689 = vmatpush1.bf16.msra.mxu1 %v1688_v6  ;;  %v698_v60 = vld [vmem:[#allocation7 + $0x3f8] sm:$0xff]  ;;  %v1708_v62 = vpack.c.bf16 %v689_v56, %v685_v54  ;;  %v693_v63 = vld [vmem:[#allocation7 + $0x3d0] sm:$0xff]  ;;  %v1714_v0 = vpack.c.bf16 %v898_v58, %v894_v57  ;;  %v902_v5 = vld [vmem:[#allocation9 + $0x48] sm:$0xff] }
 0x173   : > { %1691 = vmatprep.subr.bf16.mxu1 %v1690_v8  ;;  %v1710_v3 = vpack.c.bf16 %v698_v60, %v694_v59  ;;  %v697_v4 = vld [vmem:[#allocation7 + $0x3f0] sm:$0xff]  ;;  %v906_v6 = vld [vmem:[#allocation9 + $0x68] sm:$0xff]  ;;  %v896_v7 = vld [vmem:[#allocation9 + $0x18] sm:$0xff] }
 0x174   : > { %1629 = vmatpush1.bf16.msra.mxu0 %v1628_v1  ;;  %v893_v1 = vld [vmem:[#allocation9] sm:$0xff]  ;;  %v900_v8 = vld [vmem:[#allocation9 + $0x38] sm:$0xff]  ;;  %v1712_v11 = vpack.c.bf16 %v697_v4, %v693_v63  ;;  %v895_v12 = vld [vmem:[#allocation9 + $0x10] sm:$0xff] }
 0x175   : > { %1631 = vmatprep.subr.bf16.mxu0 %v1630_v2  ;;  %v897_v2 = vld [vmem:[#allocation9 + $0x20] sm:$0xff]  ;;  %v568_v9 = vld [vmem:[#allocation3] sm:$0xff]  ;;  %v1778_v16 = vpack.c.bf16 %v900_v8, %v896_v7  ;;  %v899_v17 = vld [vmem:[#allocation9 + $0x30] sm:$0xff] }
 0x176   : > { %1693 = vmatpush1.bf16.msra.mxu1 %v1692_v18  ;;  %v1716_v10 = vpack.c.bf16 %v897_v2, %v893_v1  ;;  %v905_v15 = vld [vmem:[#allocation9 + $0x60] sm:$0xff]  ;;  %v910_v18 = vld [vmem:[#allocation9 + $0x88] sm:$0xff]  ;;  %v908_v21 = vld [vmem:[#allocation9 + $0x78] sm:$0xff]  ;;  %v1780_v23 = vpack.c.bf16 %v899_v17, %v895_v12 }
 0x177   : > { %1695 = vmatprep.subr.bf16.mxu1 %v1694_v20  ;;  %v914_v19 = vld [vmem:[#allocation9 + $0xa8] sm:$0xff]  ;;  %v904_v20 = vld [vmem:[#allocation9 + $0x58] sm:$0xff]  ;;  %v903_v24 = vld [vmem:[#allocation9 + $0x50] sm:$0xff] }
 0x178   : > { %1633 = vmatpush1.bf16.msra.mxu0 %v1632_v13  ;;  %v1718_v13 = vpack.c.bf16 %v906_v6, %v902_v5  ;;  %v913_v27 = vld [vmem:[#allocation9 + $0xa0] sm:$0xff]  ;;  %v1782_v28 = vpack.c.bf16 %v908_v21, %v904_v20  ;;  %v907_v29 = vld [vmem:[#allocation9 + $0x70] sm:$0xff]  ;;  %v922_v31 = vld [vmem:[#allocation9 + $0xe8] sm:$0xff] }
 0x179   : > { %1635 = vmatprep.subr.bf16.mxu0 %v1634_v14  ;;  %v901_v14 = vld [vmem:[#allocation9 + $0x40] sm:$0xff]  ;;  %v916_v33 = vld [vmem:[#allocation9 + $0xb8] sm:$0xff]  ;;  %v1784_v35 = vpack.c.bf16 %v907_v29, %v903_v24  ;;  %v911_v36 = vld [vmem:[#allocation9 + $0x90] sm:$0xff] }
 0x17a   : > { %1697 = vmatpush1.bf16.msra.mxu1 %v1696_v30  ;;  %v1720_v22 = vpack.c.bf16 %v905_v15, %v901_v14  ;;  %v918_v30 = vld [vmem:[#allocation9 + $0xc8] sm:$0xff]  ;;  %v921_v39 = vld [vmem:[#allocation9 + $0xe0] sm:$0xff]  ;;  %v915_v41 = vld [vmem:[#allocation9 + $0xb0] sm:$0xff] }
 0x17b   : > { %1699 = vmatprep.subr.bf16.mxu1 %v1698_v32  ;;  %v912_v32 = vld [vmem:[#allocation9 + $0x98] sm:$0xff]  ;;  %v930_v43 = vld [vmem:[#allocation9 + $0x128] sm:$0xff]  ;;  %v1788_v47 = vpack.c.bf16 %v915_v41, %v911_v36  ;;  %v923_v51 = vld [vmem:[#allocation9 + $0xf0] sm:$0xff] }
 0x17c   : > { %1637 = vmatpush1.bf16.msra.mxu0 %v1636_v25  ;;  %v1722_v25 = vpack.c.bf16 %v914_v19, %v910_v18  ;;  %v1786_v40 = vpack.c.bf16 %v916_v33, %v912_v32  ;;  %v924_v45 = vld [vmem:[#allocation9 + $0xf8] sm:$0xff]  ;;  %v925_v56 = vld [vmem:[#allocation9 + $0x100] sm:$0xff]  ;;  %v927_v58 = vld [vmem:[#allocation9 + $0x110] sm:$0xff] }
 0x17d   : > { %1639 = vmatprep.subr.bf16.mxu0 %v1638_v26  ;;  %v909_v26 = vld [vmem:[#allocation9 + $0x80] sm:$0xff]  ;;  %v928_v52 = vld [vmem:[#allocation9 + $0x118] sm:$0xff]  ;;  %v931_v60 = vld [vmem:[#allocation9 + $0x130] sm:$0xff] }
 0x17e   : > { %1701 = vmatpush1.bf16.msra.mxu1 %v1700_v42  ;;  %v1724_v34 = vpack.c.bf16 %v913_v27, %v909_v26  ;;  %v926_v42 = vld [vmem:[#allocation9 + $0x108] sm:$0xff]  ;;  %v929_v57 = vld [vmem:[#allocation9 + $0x120] sm:$0xff]  ;;  %v940_v2 = vld [vmem:[#allocation9 + $0x178] sm:$0xff] }
 0x17f   : > { %1703 = vmatprep.subr.bf16.mxu1 %v1702_v44  ;;  %v920_v44 = vld [vmem:[#allocation9 + $0xd8] sm:$0xff]  ;;  %v1730_v48 = vpack.c.bf16 %v930_v43, %v926_v42  ;;  %v1732_v59 = vpack.c.bf16 %v929_v57, %v925_v56  ;;  %v938_v63 = vld [vmem:[#allocation9 + $0x168] sm:$0xff]  ;;  %v937_v4 = vld [vmem:[#allocation9 + $0x160] sm:$0xff] }
 0x180   : > { %1641 = vmatpush1.bf16.msra.mxu0 %v1640_v37  ;;  %v1726_v37 = vpack.c.bf16 %v922_v31, %v918_v30  ;;  %v935_v7 = vld [vmem:[#allocation9 + $0x150] sm:$0xff]  ;;  %v944_v12 = vld [vmem:[#allocation9 + $0x198] sm:$0xff]  ;;  %v941_v15 = vld [vmem:[#allocation9 + $0x180] sm:$0xff] }
 0x181   : > { %1643 = vmatprep.subr.bf16.mxu0 %v1642_v38  ;;  %v917_v38 = vld [vmem:[#allocation9 + $0xc0] sm:$0xff]  ;;  %v939_v8 = vld [vmem:[#allocation9 + $0x170] sm:$0xff]  ;;  %v948_v14 = vld [vmem:[#allocation9 + $0x1b8] sm:$0xff] }
 0x182   : > { %1705 = vmatpush1.bf16.msra.mxu1 %v1704_v53  ;;  %v1728_v46 = vpack.c.bf16 %v921_v39, %v917_v38  ;;  %v932_v53 = vld [vmem:[#allocation9 + $0x138] sm:$0xff]  ;;  %v1802_v17 = vpack.c.bf16 %v948_v14, %v944_v12  ;;  %v943_v19 = vld [vmem:[#allocation9 + $0x190] sm:$0xff]  ;;  %v949_v27 = vld [vmem:[#allocation9 + $0x1c0] sm:$0xff] }
 0x183   : > { %1707 = vmatprep.subr.bf16.mxu1 %v1706_v55  ;;  %v1794_v55 = vpack.c.bf16 %v932_v53, %v928_v52  ;;  %v947_v20 = vld [vmem:[#allocation9 + $0x1b0] sm:$0xff]  ;;  %v952_v24 = vld [vmem:[#allocation9 + $0x1d8] sm:$0xff]  ;;  %v957_v39 = vld [vmem:[#allocation9 + $0x200] sm:$0xff] }
 0x184   : > { %1645 = vmatpush1.bf16.msra.mxu0 %v1644_v49  ;;  %v1790_v49 = vpack.c.bf16 %v924_v45, %v920_v44  ;;  %v1804_v21 = vpack.c.bf16 %v947_v20, %v943_v19  ;;  %v956_v26 = vld [vmem:[#allocation9 + $0x1f8] sm:$0xff]  ;;  %v951_v31 = vld [vmem:[#allocation9 + $0x1d0] sm:$0xff]  ;;  %v969_v52 = vld [vmem:[#allocation9 + $0x260] sm:$0xff] }
 0x185   : > { %1647 = vmatprep.subr.bf16.mxu0 %v1646_v50  ;;  %v919_v50 = vld [vmem:[#allocation9 + $0xd0] sm:$0xff]  ;;  %v1806_v29 = vpack.c.bf16 %v956_v26, %v952_v24  ;;  %v960_v36 = vld [vmem:[#allocation9 + $0x218] sm:$0xff]  ;;  %v985_v12 = vld [vmem:[#allocation9 + $0x2e0] sm:$0xff] }
 0x186   : > { %1709 = vmatpush1.bf16.msra.mxu1 %v1708_v62  ;;  %v1792_v54 = vpack.c.bf16 %v923_v51, %v919_v50  ;;  %v934_v62 = vld [vmem:[#allocation9 + $0x148] sm:$0xff]  ;;  %v955_v32 = vld [vmem:[#allocation9 + $0x1f0] sm:$0xff]  ;;  %v964_v38 = vld [vmem:[#allocation9 + $0x238] sm:$0xff] }
 0x187   : > { %1711 = vmatprep.subr.bf16.mxu1 %v1710_v3  ;;  %v1734_v1 = vpack.c.bf16 %v938_v63, %v934_v62  ;;  %v933_v3 = vld [vmem:[#allocation9 + $0x140] sm:$0xff]  ;;  %v1808_v33 = vpack.c.bf16 %v955_v32, %v951_v31  ;;  %v1810_v41 = vpack.c.bf16 %v964_v38, %v960_v36  ;;  %v959_v43 = vld [vmem:[#allocation9 + $0x210] sm:$0xff]  ;;  %v972_v50 = vld [vmem:[#allocation9 + $0x278] sm:$0xff] }
 0x188   : > { %1649 = vmatpush1.bf16.msra.mxu0 %v1648_v61  ;;  %v1796_v61 = vpack.c.bf16 %v931_v60, %v927_v58  ;;  %v1736_v6 = vpack.c.bf16 %v937_v4, %v933_v3  ;;  %v963_v44 = vld [vmem:[#allocation9 + $0x230] sm:$0xff]  ;;  %v965_v51 = vld [vmem:[#allocation9 + $0x240] sm:$0xff]  ;;  %v974_v58 = vld [vmem:[#allocation9 + $0x288] sm:$0xff] }
 0x189   : > { %1715 = vmatprep.subr.bf16.mxu0 %v1714_v0  ;;  %v936_v0 = vld [vmem:[#allocation9 + $0x158] sm:$0xff]  ;;  %v1812_v45 = vpack.c.bf16 %v963_v44, %v959_v43  ;;  %v971_v56 = vld [vmem:[#allocation9 + $0x270] sm:$0xff]  ;;  %v973_v63 = vld [vmem:[#allocation9 + $0x280] sm:$0xff] }
 0x18a   : > { %1713 = vmatpush1.bf16.msra.mxu1 %v1712_v11  ;;  %v1798_v5 = vpack.c.bf16 %v940_v2, %v936_v0  ;;  %v946_v11 = vld [vmem:[#allocation9 + $0x1a8] sm:$0xff]  ;;  %v976_v60 = vld [vmem:[#allocation9 + $0x298] sm:$0xff]  ;;  %v977_v0 = vld [vmem:[#allocation9 + $0x2a0] sm:$0xff] }
 0x18b   : > { %786 = vmatmul.mubr.f32.vlgmr.msra.gmra.mrb[0].mxu0 %v568_v9  ;;  %1779 = vmatprep.subr.bf16.mxu1 %v1778_v16  ;;  %v945_v16 = vld [vmem:[#allocation9 + $0x1a0] sm:$0xff]  ;;  %v980_v62 = vld [vmem:[#allocation9 + $0x2b8] sm:$0xff]  ;;  %v1756_v2 = vpack.c.bf16 %v977_v0, %v973_v63  ;;  %v975_v3 = vld [vmem:[#allocation9 + $0x290] sm:$0xff] }
 0x18c   : > { %1717 = vmatpush1.bf16.msra.mxu0 %v1716_v10  ;;  %v942_v10 = vld [vmem:[#allocation9 + $0x188] sm:$0xff]  ;;  %v1740_v18 = vpack.c.bf16 %v945_v16, %v941_v15  ;;  %v979_v4 = vld [vmem:[#allocation9 + $0x2b0] sm:$0xff]  ;;  %v992_v20 = vld [vmem:[#allocation9 + $0x318] sm:$0xff] }
 0x18d   : > { %1719 = vmatprep.subr.bf16.mxu0 %v1718_v13  ;;  %857 = vmatmul.mubr.f32.vlgmr.msra.gmra.mrb[0].mxu1 %v568_v9  ;;  %v1800_v9 = vpack.c.bf16 %v939_v8, %v935_v7  ;;  %v1738_v13 = vpack.c.bf16 %v946_v11, %v942_v10  ;;  %v986_v7 = vld [vmem:[#allocation9 + $0x2e8] sm:$0xff]  ;;  %v984_v8 = vld [vmem:[#allocation9 + $0x2d8] sm:$0xff]  ;;  %v981_v11 = vld [vmem:[#allocation9 + $0x2c0] sm:$0xff] }
 0x18e   : > { %1781 = vmatpush1.bf16.msra.mxu1 %v1780_v23  ;;  %v954_v23 = vld [vmem:[#allocation9 + $0x1e8] sm:$0xff]  ;;  %v988_v10 = vld [vmem:[#allocation9 + $0x2f8] sm:$0xff]  ;;  %v1760_v14 = vpack.c.bf16 %v985_v12, %v981_v11  ;;  %v983_v15 = vld [vmem:[#allocation9 + $0x2d0] sm:$0xff] }
 0x18f   : > { %1783 = vmatprep.subr.bf16.mxu1 %v1782_v28  ;;  %v953_v28 = vld [vmem:[#allocation9 + $0x1e0] sm:$0xff]  ;;  %v987_v16 = vld [vmem:[#allocation9 + $0x2f0] sm:$0xff]  ;;  %v994_v19 = vld [vmem:[#allocation9 + $0x328] sm:$0xff] }
 0x190   : > { %1721 = vmatpush1.bf16.msra.mxu0 %v1720_v22  ;;  %v950_v22 = vld [vmem:[#allocation9 + $0x1c8] sm:$0xff]  ;;  %v1744_v30 = vpack.c.bf16 %v953_v28, %v949_v27  ;;  %v993_v24 = vld [vmem:[#allocation9 + $0x320] sm:$0xff]  ;;  %v991_v27 = vld [vmem:[#allocation9 + $0x310] sm:$0xff] }
 0x191   : > { %1723 = vmatprep.subr.bf16.mxu0 %v1722_v25  ;;  %v1742_v25 = vpack.c.bf16 %v954_v23, %v950_v22  ;;  %v996_v22 = vld [vmem:[#allocation9 + $0x338] sm:$0xff]  ;;  %v989_v23 = vld [vmem:[#allocation9 + $0x300] sm:$0xff]  ;;  %v995_v28 = vld [vmem:[#allocation9 + $0x330] sm:$0xff] }
 0x192   : > { %1785 = vmatpush1.bf16.msra.mxu1 %v1784_v35  ;;  %v962_v35 = vld [vmem:[#allocation9 + $0x228] sm:$0xff]  ;;  %v1764_v26 = vpack.c.bf16 %v993_v24, %v989_v23  ;;  %v1000_v32 = vld [vmem:[#allocation9 + $0x358] sm:$0xff]  ;;  %v1001_v36 = vld [vmem:[#allocation9 + $0x360] sm:$0xff] }
 0x193   : > { %1787 = vmatprep.subr.bf16.mxu1 %v1786_v40  ;;  %v961_v40 = vld [vmem:[#allocation9 + $0x220] sm:$0xff]  ;;  %v1002_v31 = vld [vmem:[#allocation9 + $0x368] sm:$0xff]  ;;  %v1008_v44 = vld [vmem:[#allocation9 + $0x398] sm:$0xff] }
 0x194   : > { %1725 = vmatpush1.bf16.msra.mxu0 %v1724_v34  ;;  %v958_v34 = vld [vmem:[#allocation9 + $0x208] sm:$0xff]  ;;  %v1748_v42 = vpack.c.bf16 %v961_v40, %v957_v39  ;;  %v999_v39 = vld [vmem:[#allocation9 + $0x350] sm:$0xff] }
 0x195   : > { %1727 = vmatprep.subr.bf16.mxu0 %v1726_v37  ;;  %v1746_v37 = vpack.c.bf16 %v962_v35, %v958_v34  ;;  %v1004_v34 = vld [vmem:[#allocation9 + $0x378] sm:$0xff]  ;;  %v997_v35 = vld [vmem:[#allocation9 + $0x340] sm:$0xff]  ;;  %v1003_v40 = vld [vmem:[#allocation9 + $0x370] sm:$0xff] }
 0x196   : > { %1789 = vmatpush1.bf16.msra.mxu1 %v1788_v47  ;;  %v970_v47 = vld [vmem:[#allocation9 + $0x268] sm:$0xff]  ;;  %v1768_v38 = vpack.c.bf16 %v1001_v36, %v997_v35  ;;  %v1019_v63 = vld [vmem:[#allocation9 + $0x3f0] sm:$0xff] }
 0x197   : > { %1791 = vmatprep.subr.bf16.mxu1 %v1790_v49  ;;  %v1010_v43 = vld [vmem:[#allocation9 + $0x3a8] sm:$0xff] }
 0x198   : > { %1729 = vmatpush1.bf16.msra.mxu0 %v1728_v46  ;;  %v966_v46 = vld [vmem:[#allocation9 + $0x248] sm:$0xff] }
 0x199   : > { %1731 = vmatprep.subr.bf16.mxu0 %v1730_v48  ;;  %v968_v48 = vld [vmem:[#allocation9 + $0x258] sm:$0xff]  ;;  %v1750_v49 = vpack.c.bf16 %v970_v47, %v966_v46 }
 0x19a   : > { %1793 = vmatpush1.bf16.msra.mxu1 %v1792_v54  ;;  %v1814_v53 = vpack.c.bf16 %v972_v50, %v968_v48  ;;  %v1752_v54 = vpack.c.bf16 %v969_v52, %v965_v51  ;;  %v1005_v48 = vld [vmem:[#allocation9 + $0x380] sm:$0xff]  ;;  %v1007_v50 = vld [vmem:[#allocation9 + $0x390] sm:$0xff] }
 0x19b   : > { %1795 = vmatprep.subr.bf16.mxu1 %v1794_v55  ;;  %v967_v55 = vld [vmem:[#allocation9 + $0x250] sm:$0xff] }
 0x19c   : > { %1733 = vmatpush1.bf16.msra.mxu0 %v1732_v59  ;;  %v1816_v57 = vpack.c.bf16 %v971_v56, %v967_v55  ;;  %v978_v59 = vld [vmem:[#allocation9 + $0x2a8] sm:$0xff]  ;;  %v1011_v52 = vld [vmem:[#allocation9 + $0x3b0] sm:$0xff] }
 0x19d   : > { %1735 = vmatprep.subr.bf16.mxu0 %v1734_v1  ;;  %v1818_v1 = vpack.c.bf16 %v980_v62, %v976_v60  ;;  %v1836_v55 = vpack.c.bf16 %v1011_v52, %v1007_v50  ;;  %v1015_v62 = vld [vmem:[#allocation9 + $0x3d0] sm:$0xff] }
 0x19e   : > { %1797 = vmatpush1.bf16.msra.mxu1 %v1796_v61  ;;  %v1754_v61 = vpack.c.bf16 %v978_v59, %v974_v58  ;;  %v1020_v58 = vld [vmem:[#allocation9 + $0x3f8] sm:$0xff]  ;;  %v1013_v59 = vld [vmem:[#allocation9 + $0x3c0] sm:$0xff] }
 0x19f   : > { %1799 = vmatprep.subr.bf16.mxu1 %v1798_v5  ;;  %v1820_v5 = vpack.c.bf16 %v979_v4, %v975_v3  ;;  %v701_v3 = vlaneseq }
 0x1a0   : > { %1737 = vmatpush1.bf16.msra.mxu0 %v1736_v6  ;;  %v982_v6 = vld [vmem:[#allocation9 + $0x2c8] sm:$0xff] }
 0x1a1   : > { %1739 = vmatprep.subr.bf16.mxu0 %v1738_v13  ;;  %v1822_v13 = vpack.c.bf16 %v988_v10, %v984_v8  ;;  %v2732_v4 = vshrl.u32 %v701_v3, 7 }
 0x1a2   : > { %1801 = vmatpush1.bf16.msra.mxu1 %v1800_v9  ;;  %v1758_v9 = vpack.c.bf16 %v986_v7, %v982_v6  ;;  %v699_v6 = vld [vmem:[%s2802_s5] sm:$0xf] }
 0x1a3   : > { %1803 = vmatprep.subr.bf16.mxu1 %v1802_v17  ;;  %v1824_v17 = vpack.c.bf16 %v987_v16, %v983_v15  ;;  %v707_v7 = vsub.s32 1, %v2732_v4  ;;  %v715_v10 = vsub.s32 3, %v2732_v4 }
 0x1a4   : > { %1741 = vmatpush1.bf16.msra.mxu0 %v1740_v18  ;;  %v990_v18 = vld [vmem:[#allocation9 + $0x308] sm:$0xff] }
 0x1a5   : > { %1743 = vmatprep.subr.bf16.mxu0 %v1742_v25  ;;  %v1826_v25 = vpack.c.bf16 %v996_v22, %v992_v20  ;;  %v716_v16 = vrot.slane %v699_v6, %v715_v10 }
 0x1a6   : > { %1805 = vmatpush1.bf16.msra.mxu1 %v1804_v21  ;;  %v1762_v21 = vpack.c.bf16 %v994_v19, %v990_v18  ;;  %v711_v18 = vsub.s32 2, %v2732_v4 }
 0x1a7   : > { %1807 = vmatprep.subr.bf16.mxu1 %v1806_v29  ;;  %v1828_v29 = vpack.c.bf16 %v995_v28, %v991_v27 }
 0x1a8   : > { %1745 = vmatpush1.bf16.msra.mxu0 %v1744_v30  ;;  %v998_v30 = vld [vmem:[#allocation9 + $0x348] sm:$0xff]  ;;  %v712_v22 = vrot.slane %v699_v6, %v711_v18 }
 0x1a9   : > { %1747 = vmatprep.subr.bf16.mxu0 %v1746_v37  ;;  %v1830_v37 = vpack.c.bf16 %v1004_v34, %v1000_v32 }
 0x1aa   : > { %1809 = vmatpush1.bf16.msra.mxu1 %v1808_v33  ;;  %v1766_v33 = vpack.c.bf16 %v1002_v31, %v998_v30  ;;  %v570_v31 = vld [vmem:[%s2800_s3] sm:$0xff] }
 0x1ab   : > { %1811 = vmatprep.subr.bf16.mxu1 %v1810_v41  ;;  %v1006_v41 = vld [vmem:[#allocation9 + $0x388] sm:$0xff] }
 0x1ac   : > { %1749 = vmatpush1.bf16.msra.mxu0 %v1748_v42  ;;  %v1832_v42 = vpack.c.bf16 %v1003_v40, %v999_v39  ;;  %v1770_v46 = vpack.c.bf16 %v1010_v43, %v1006_v41  ;;  %v1021_v41 = vld [vmem:[%s2843_s19] sm:$0xf] }
 0x1ad   : > { %1751 = vmatprep.subr.bf16.mxu0 %v1750_v49  ;;  %v1009_v49 = vld [vmem:[#allocation9 + $0x3a0] sm:$0xff]  ;;  %v1030_v43 = vrot.slane %v1021_v41, %v707_v7  ;;  %v1038_v52 = vrot.slane %v1021_v41, %v715_v10 }
 0x1ae   : > { %1813 = vmatpush1.bf16.msra.mxu1 %v1812_v45  ;;  %v1012_v45 = vld [vmem:[#allocation9 + $0x3b8] sm:$0xff]  ;;  %v1772_v51 = vpack.c.bf16 %v1009_v49, %v1005_v48 }
 0x1af   : > { %1815 = vmatprep.subr.bf16.mxu1 %v1814_v53  ;;  %v1834_v47 = vpack.c.bf16 %v1012_v45, %v1008_v44  ;;  %v1014_v53 = vld [vmem:[#allocation9 + $0x3c8] sm:$0xff] }
 0x1b0   : > { %1753 = vmatpush1.bf16.msra.mxu0 %v1752_v54  ;;  %v1018_v54 = vld [vmem:[#allocation9 + $0x3e8] sm:$0xff] }
 0x1b1   : > { %1755 = vmatprep.subr.bf16.mxu0 %v1754_v61  ;;  %v1774_v56 = vpack.c.bf16 %v1018_v54, %v1014_v53  ;;  %v1017_v61 = vld [vmem:[#allocation9 + $0x3e0] sm:$0xff]  ;;  %v1034_v54 = vrot.slane %v1021_v41, %v711_v18 }
 0x1b2   : > { %1817 = vmatpush1.bf16.msra.mxu1 %v1816_v57  ;;  %v1016_v57 = vld [vmem:[#allocation9 + $0x3d8] sm:$0xff]  ;;  %v1776_v0 = vpack.c.bf16 %v1017_v61, %v1013_v59 }
 0x1b3   : > { %1819 = vmatprep.subr.bf16.mxu1 %v1818_v1  ;;  %v1838_v60 = vpack.c.bf16 %v1020_v58, %v1016_v57  ;;  %v1516_v1 = vld [vmem:[%s2799_s2 + $0x8] sm:$0xff] }
 0x1b4   : > { %1757 = vmatpush1.bf16.msra.mxu0 %v1756_v2  ;;  %v1840_v2 = vpack.c.bf16 %v1019_v63, %v1015_v62  ;;  %1107 = vmatprep.mubr.f32.mxu0 %v1516_v1  ;;  %v1517_v63 = vld [vmem:[%s2800_s3 + $0x8] sm:$0xff] }
 0x1b5   : > { %1759 = vmatprep.subr.bf16.mxu0 %v1758_v9  ;;  %1178 = vmatprep.mubr.f32.mxu1 %v1516_v1  ;;  %v708_v9 = vrot.slane %v699_v6, %v707_v7 }
 0x1b6   : > { %1821 = vmatpush1.bf16.msra.mxu1 %v1820_v5  ;;  %v703_v5 = vsub.s32 0, %v2732_v4 }
 0x1b7   : > { %1823 = vmatprep.subr.bf16.mxu1 %v1822_v13 }
 0x1b8   : > { %1761 = vmatpush1.bf16.msra.mxu0 %v1760_v14  ;;  %v704_v8 = vrot.slane %v699_v6, %v703_v5 }
 0x1b9   : > { %1763 = vmatprep.subr.bf16.mxu0 %v1762_v21 }
 0x1ba   : > { %1825 = vmatpush1.bf16.msra.mxu1 %v1824_v17 }
 0x1bb   : > { %1827 = vmatprep.subr.bf16.mxu1 %v1826_v25 }
 0x1bc   : > { %1765 = vmatpush1.bf16.msra.mxu0 %v1764_v26 }
 0x1bd   : > { %1767 = vmatprep.subr.bf16.mxu0 %v1766_v33 }
 0x1be   : > { %1829 = vmatpush1.bf16.msra.mxu1 %v1828_v29 }
 0x1bf   : > { %1831 = vmatprep.subr.bf16.mxu1 %v1830_v37 }
 0x1c0   : > { %1769 = vmatpush1.bf16.msra.mxu0 %v1768_v38 }
 0x1c1   : > { %1771 = vmatprep.subr.bf16.mxu0 %v1770_v46 }
 0x1c2   : > { %1833 = vmatpush1.bf16.msra.mxu1 %v1832_v42  ;;  %v1026_v42 = vrot.slane %v1021_v41, %v703_v5 }
 0x1c3   : > { %1835 = vmatprep.subr.bf16.mxu1 %v1834_v47 }
 0x1c4   : > { %1773 = vmatpush1.bf16.msra.mxu0 %v1772_v51 }
 0x1c5   : > { %1775 = vmatprep.subr.bf16.mxu0 %v1774_v56 }
 0x1c6   : > { %1837 = vmatpush1.bf16.msra.mxu1 %v1836_v55 }
 0x1c7   : > { %1839 = vmatprep.subr.bf16.mxu1 %v1838_v60 }
 0x1c8   : > { %1777 = vmatpush1.bf16.msra.mxu0 %v1776_v0 }
 0x1ca   : > { %1841 = vmatpush1.bf16.msra.mxu1 %v1840_v2 }
 0x25e   : > { %v787_v11 = vpop.f32.mrb[0].mxu0 }
 0x25f   : > { %v788_v12 = vadd.f32 %v787_v11, %v704_v8  ;;  %v789_v13 = vpop.f32.mrb[1].mxu0 }
 0x260   : > { %v790_v14 = vadd.f32 %v789_v13, %v708_v9  ;;  %v858_v19 = vpop.f32.mrb[0].mxu1 }
 0x261   : > { %v1513_v15 = vmul.f32 -1.442695, %v788_v12  ;;  %v860_v20 = vpop.f32.mrb[1].mxu1  ;;  %v859_v24 = vadd.f32 %v858_v19, %v712_v22 }
 0x262   : > { %v1514_v17 = vmul.f32 -1.442695, %v790_v14  ;;  %v861_v21 = vadd.f32 %v860_v20, %v716_v16 }
 0x263   : > { %1943 = vpow2.f32 %v1513_v15 }
 0x264   : > { %1945 = vpow2.f32 %v1514_v17  ;;  %v1515_v23 = vmul.f32 -1.442695, %v861_v21 }
 0x266   : > { %1947 = vpow2.f32 %v1515_v23 }
 0x267   : > { %1949 = vtanh.f32 %v859_v24 }
 0x26d   : > { %v1944_v25 = vpop.eup %1943 }
 0x26e   : > { %v1946_v26 = vpop.eup %1945  ;;  %v866_v27 = vadd.f32 1.0, %v1944_v25 }
 0x26f   : > { %v872_v28 = vadd.f32 1.0, %v1946_v26 }
 0x270   : > { %1951 = vrcp.f32 %v866_v27  ;;  %v1948_v29 = vpop.eup %1947 }
 0x271   : > { %1953 = vrcp.f32 %v872_v28  ;;  %v1950_v30 = vpop.eup %1949  ;;  %v879_v33 = vadd.f32 1.0, %v1948_v29 }
 0x273   : > { %1955 = vrcp.f32 %v879_v33 }
 0x27a   : > { %v1952_v32 = vpop.eup %1951 }
 0x27b   : > { %v1954_v34 = vpop.eup %1953  ;;  %v883_v35 = vmul.f32 %v1952_v32, %v1950_v30 }
 0x27c   : > { %v882_v36 = vmul.f32 %v1954_v34, %v570_v31 }
 0x27d   : > { %v1956_v38 = vpop.eup %1955 }
 0x27e   : > { %v884_v37 = vadd.f32 %v883_v35, %v882_v36 }
 0x280   : > { %1957 = vtanh.f32 %v884_v37  ;;  %888 = vst [vmem:[%s2841_s14] sm:$0xff] %v884_v37 }
 0x28a   : > { %v1958_v39 = vpop.eup %1957 }
 0x28b   : > { %v886_v40 = vmul.f32 %v1958_v39, %v1956_v38 }
 0x28d   : > { %887 = vst [vmem:[%s2842_s29] sm:$0xff] %v886_v40  ;;  %1108 = vmatmul.mubr.f32.vlgmr.msra.gmra.mrb[2].mxu0 %v886_v40  ;;  %1179 = vmatmul.mubr.f32.vlgmr.msra.gmra.mrb[2].mxu1 %v886_v40 }
 0x360   : > { %v1109_v44 = vpop.f32.mrb[2].mxu0  ;;  %v1180_v45 = vpop.f32.mrb[2].mxu1 }
 0x361   : > { %v1110_v46 = vadd.f32 %v1109_v44, %v1026_v42  ;;  %v1111_v47 = vpop.f32.mrb[3].mxu0  ;;  %v1182_v48 = vpop.f32.mrb[3].mxu1  ;;  %v1181_v56 = vadd.f32 %v1180_v45, %v1034_v54 }
 0x362   : > { %v1112_v49 = vadd.f32 %v1111_v47, %v1030_v43  ;;  %v1183_v53 = vadd.f32 %v1182_v48, %v1038_v52 }
 0x363   : > { %v1518_v50 = vmul.f32 -1.442695, %v1110_v46 }
 0x364   : > { %v1519_v51 = vmul.f32 -1.442695, %v1112_v49  ;;  %v1520_v55 = vmul.f32 -1.442695, %v1183_v53 }
 0x365   : > { %1959 = vpow2.f32 %v1518_v50 }
 0x366   : > { %1961 = vpow2.f32 %v1519_v51 }
 0x367   : > { %1963 = vpow2.f32 %v1520_v55 }
 0x368   : > { %1965 = vtanh.f32 %v1181_v56 }
 0x36f   : > { %v1960_v57 = vpop.eup %1959 }
 0x370   : > { %v1962_v58 = vpop.eup %1961  ;;  %v1188_v59 = vadd.f32 1.0, %v1960_v57 }
 0x371   : > { %v1194_v60 = vadd.f32 1.0, %v1962_v58  ;;  %v1964_v61 = vpop.eup %1963 }
 0x372   : > { %1967 = vrcp.f32 %v1188_v59  ;;  %v1966_v62 = vpop.eup %1965  ;;  %v1201_v3 = vadd.f32 1.0, %v1964_v61 }
 0x373   : > { %1969 = vrcp.f32 %v1194_v60 }
 0x374   : > { %1971 = vrcp.f32 %v1201_v3 }
 0x37c   : > { %v1968_v0 = vpop.eup %1967 }
 0x37d   : > { %v1970_v1 = vpop.eup %1969  ;;  %v1205_v2 = vmul.f32 %v1968_v0, %v1966_v62 }
 0x37e   : > { %v1204_v4 = vmul.f32 %v1970_v1, %v1517_v63  ;;  %v1972_v6 = vpop.eup %1971 }
 0x380   : > { %v1206_v5 = vadd.f32 %v1205_v2, %v1204_v4 }
 0x382   : > { %1973 = vtanh.f32 %v1206_v5  ;;  %1522 = vst [vmem:[%s2841_s14 + $0x8] sm:$0xff] %v1206_v5 }
 0x38c   : > { %v1974_v7 = vpop.eup %1973 }
 0x38d   : > { %v1208_v8 = vmul.f32 %v1974_v7, %v1972_v6 }
 0x38f   : > { %1521 = vst [vmem:[%s2842_s29 + $0x8] sm:$0xff] %v1208_v8  ;;  %1213 = vst [vmem:[#allocation2] sm:$0xff] %v1208_v8 }
 0x390 PF: > { %v1215_v9 = vld [vmem:[%s2576_s20] sm:$0xff]  ;;  %v1216_v10 = vld [vmem:[%s2576_s20 + $0x8] sm:$0xff]  ;;  %v1217_v11 = vld [vmem:[%s2576_s20 + $0x10] sm:$0xff]  ;;  %v2344_v12 = vmov 0.0|0.0   ;;  %vm2345_vm0 = vmmov 0   ;;  %v2346_v15 = vmov 0.0   ;;  %s2844_s4 = scalar_lea.vmem %s2806_s9, %s2584_s24 }
 0x391   : > { %1842 = vmatprep.subr.bf16.mxu0 %v2344_v12  ;;  %v1843_v13 = vpack.c.bf16 %v1216_v10, %v1215_v9  ;;  %v1218_v14 = vld [vmem:[%s2576_s20 + $0x18] sm:$0xff]  ;;  %1583 = vmatprep.mubr.msk.f32.mxu0 %vm2345_vm0, %v2346_v15  ;;  %v1219_v17 = vld [vmem:[%s2576_s20 + $0x20] sm:$0xff]  ;;  %v1220_v18 = vld [vmem:[%s2576_s20 + $0x28] sm:$0xff] }
 0x392   : > { %v1846_v16 = vpack.c.bf16 %v1218_v14, %v1217_v11  ;;  %v1849_v19 = vpack.c.bf16 %v1220_v18, %v1219_v17  ;;  %v1221_v20 = vld [vmem:[%s2576_s20 + $0x30] sm:$0xff]  ;;  %v1222_v21 = vld [vmem:[%s2576_s20 + $0x38] sm:$0xff]  ;;  %v1223_v23 = vld [vmem:[%s2576_s20 + $0x40] sm:$0xff] }
 0x393   : > { %1844 = vmatpush3.bf16.msra.mxu0 %v1843_v13  ;;  %v1852_v22 = vpack.c.bf16 %v1222_v21, %v1221_v20  ;;  %v1224_v24 = vld [vmem:[%s2576_s20 + $0x48] sm:$0xff]  ;;  %v1225_v26 = vld [vmem:[%s2576_s20 + $0x50] sm:$0xff]  ;;  %v1226_v27 = vld [vmem:[%s2576_s20 + $0x58] sm:$0xff] }
 0x394   : > { %1845 = vmatprep.subr.bf16.mxu0 %v2344_v12  ;;  %v1855_v25 = vpack.c.bf16 %v1224_v24, %v1223_v23  ;;  %v1858_v28 = vpack.c.bf16 %v1226_v27, %v1225_v26  ;;  %v1227_v29 = vld [vmem:[%s2576_s20 + $0x60] sm:$0xff]  ;;  %v1228_v30 = vld [vmem:[%s2576_s20 + $0x68] sm:$0xff]  ;;  %v1229_v32 = vld [vmem:[%s2576_s20 + $0x70] sm:$0xff] }
 0x395   : > { %v1861_v31 = vpack.c.bf16 %v1228_v30, %v1227_v29  ;;  %v1230_v33 = vld [vmem:[%s2576_s20 + $0x78] sm:$0xff]  ;;  %v1523_v36 = vld [vmem:[%s2844_s4] ss:$0 sm:$0xff] }
 0x396   : > { %v1864_v34 = vpack.c.bf16 %v1230_v33, %v1229_v32  ;;  %v1214_v35 = vld [vmem:[#allocation2] sm:$0xff] }
 0x397   : > { %1847 = vmatpush3.bf16.msra.mxu0 %v1846_v16 }
 0x398   : > { %1848 = vmatprep.subr.bf16.mxu0 %v2344_v12 }
 0x39b   : > { %1850 = vmatpush3.bf16.msra.mxu0 %v1849_v19 }
 0x39c   : > { %1851 = vmatprep.subr.bf16.mxu0 %v2344_v12 }
 0x39f   : > { %1853 = vmatpush3.bf16.msra.mxu0 %v1852_v22 }
 0x3a0   : > { %1854 = vmatprep.subr.bf16.mxu0 %v2344_v12 }
 0x3a3   : > { %1856 = vmatpush3.bf16.msra.mxu0 %v1855_v25 }
 0x3a4   : > { %1857 = vmatprep.subr.bf16.mxu0 %v2344_v12 }
 0x3a7   : > { %1859 = vmatpush3.bf16.msra.mxu0 %v1858_v28 }
 0x3a8   : > { %1860 = vmatprep.subr.bf16.mxu0 %v2344_v12 }
 0x3ab   : > { %1862 = vmatpush3.bf16.msra.mxu0 %v1861_v31 }
 0x3ac   : > { %1863 = vmatprep.subr.bf16.mxu0 %v2344_v12 }
 0x3af   : > { %1865 = vmatpush3.bf16.msra.mxu0 %v1864_v34 }
 0x3b2   : > { %1584 = vmatmul.mubr.f32.vlgmr.msra.gmra.mrb[0].mxu0 %v1214_v35 }
 0x485   : > { %v1304_v37 = vpop.f32.mrb[0].mxu0 }
 0x486   : > { %v1305_v38 = vadd.f32 %v1523_v36, %v1304_v37  ;;  %v1585_v39 = vpop.f32.mrb[1].mxu0 }
 0x488   : > { %1308 = vst [vmem:[%s2594_s12] sm:$0xff] %v1305_v38 }
 0x489 PF: > { %s2845_s28 = sld [smem:[#allocation42_spill]]  ;;  %s2846_s20 = sld [smem:[#allocation43_spill]] }
 0x48a   : > { %s2847_s26 = smov %s2317_s27  ;;  %s2848_s27 = smov %s2321_s0 }
 0x48f   : > { %p28_p9 = scmp.ge.s32.totalorder %s2845_s28, 4   ;;  %s2849_s0 = smov %s2846_s20 }
 0x491   :  { %30 = sbr.rel (!%p28_p9) target bundleno = 20 (0x14), region = 187 }
 0x498   :  { %1340 = vsyncpa [#allocation8], 1 }
 0x499   :  { %1342 = vsyncpa [#allocation8 + $0x1], 1 }
 0x49a   :  { %1343 = vsyncpa [#allocation10], 1 }
 0x49b   :  { %1344 = vsyncmov [#allocation4] }
 0x49e   :  { %s1345_s24 = vpop.sfrf %1344 }
 0x49f   :  { %p1526_p12 = scmp.ne.s32.totalorder %s1345_s24, 0 }
 0x4a1   :  { %1349 = shalt.err (%p1526_p12)  }
 0x4a2   :  { %1351 = vsyncmov [#allocation4 + $0x1] }
 0x4a5   :  { %s1352_s12 = vpop.sfrf %1351 }
 0x4a6   :  { %p1527_p2 = scmp.ne.s32.totalorder %s1352_s12, 0 }
 0x4a8   :  { %1356 = shalt.err (%p1527_p2)  }
 0x4a9   :  { %1358 = vsyncmov [#allocation4 + $0x2] }
 0x4ac   :  { %s1359_s18 = vpop.sfrf %1358 }
 0x4ad   :  { %p1528_p4 = scmp.ne.s32.totalorder %s1359_s18, 0 }
 0x4af   :  { %1363 = shalt.err (%p1528_p4)  }
 0x4b0   :  { %1365 = vsyncmov [#allocation4 + $0x3] }
 0x4b3   :  { %s1366_s6 = vpop.sfrf %1365 }
 0x4b4   :  { %p1529_p3 = scmp.ne.s32.totalorder %s1366_s6, 0 }
 0x4b6   :  { %1370 = shalt.err (%p1529_p3)  }
 0x4b7   :  { %1372 = vsyncmov [#allocation4 + $0x4] }
 0x4ba   :  { %s1373_s1 = vpop.sfrf %1372 }
 0x4bb   :  { %p1530_p13 = scmp.ne.s32.totalorder %s1373_s1, 0 }
 0x4bd   :  { %1377 = shalt.err (%p1530_p13)  }
 0x4be   :  { %1379 = vsyncmov [#allocation4 + $0x5] }
 0x4c1   :  { %s1380_s2 = vpop.sfrf %1379 }
 0x4c2   :  { %p1531_p1 = scmp.ne.s32.totalorder %s1380_s2, 0 }
 0x4c4   :  { %1384 = shalt.err (%p1531_p1)  }
 0x4c5   :  { %1386 = vsyncmov [#allocation4 + $0x6] }
 0x4c8   :  { %s1387_s3 = vpop.sfrf %1386 }
 0x4c9   :  { %p1532_p5 = scmp.ne.s32.totalorder %s1387_s3, 0 }
 0x4cb   :  { %1391 = shalt.err (%p1532_p5)  }
 0x4cc   :  { %1393 = vsyncmov [#allocation4 + $0x7] }
 0x4cf   :  { %s1394_s5 = vpop.sfrf %1393 }
 0x4d0   :  { %p1533_p10 = scmp.ne.s32.totalorder %s1394_s5, 0 }
 0x4d2   :  { %1398 = shalt.err (%p1533_p10)  }

</bundles_post_ra>
